<compile_context>
chip_gen: v5e
topology: v5e:2x2
jax: 0.10.0
libtpu: 0.0.40
codegen_flags: <defaults>
</compile_context>

<pallas_src>
import functools

import jax
import jax.numpy as jnp
from jax.experimental import pallas as pl
from jax.experimental.pallas import tpu as pltpu


def cross_attention_kernel(h_ref, enc_ref, wh_ref, we_ref, b_ref, v_ref,
                           out_ref, *, s_valid):
    # h_ref:  (bb, H)            enc_ref: (bb, S_pad, K_pad)
    # wh_ref: (H, H)             we_ref:  (K_pad, H)
    # b_ref:  (1, H)             v_ref:   (1, H)
    # out_ref: (bb, S_pad)       (columns >= s_valid are padding -> 0)
    bb, s_pad, k_pad = enc_ref.shape
    H = h_ref.shape[1]

    # Hidden projected once per batch row (not per (b, s) pair); bias folded in.
    h_proj = (
        jnp.dot(h_ref[...], wh_ref[...], preferred_element_type=jnp.float32)
        + b_ref[...]
    )                                                          # (bb, H)

    # Encoder projection: a single 2-D MXU matmul.  S_pad and K_pad are
    # multiples of (8, 128), so this reshape is tile-aligned (no relayout).
    enc2 = enc_ref[...].reshape(bb * s_pad, k_pad)             # (bb*S_pad, K_pad)
    e_proj = jnp.dot(enc2, we_ref[...], preferred_element_type=jnp.float32)
    e_proj = e_proj.reshape(bb, s_pad, H)                      # (bb, S_pad, H)

    # energy = tanh(W_h h + W_e enc + b), broadcasting h_proj over S.
    energy = jnp.tanh(e_proj + h_proj[:, None, :])             # (bb, S_pad, H)

    # attention logits: v-weighted reduction over H.
    att = jnp.sum(energy * v_ref[...][None, :, :], axis=2)     # (bb, S_pad)

    # Mask padded sequence columns before softmax (exp -> exactly 0 there).
    if s_valid < s_pad:
        col = jax.lax.broadcasted_iota(jnp.int32, (bb, s_pad), 1)
        att = jnp.where(col < s_valid, att, -1e30)

    # Softmax over the sequence axis (exact normalization -> rows sum to 1).
    m = jnp.max(att, axis=1, keepdims=True)
    e = jnp.exp(att - m)
    denom = jnp.sum(e, axis=1, keepdims=True)
    out_ref[...] = (e / denom).astype(out_ref.dtype)


def _round_up(x, m):
    return ((x + m - 1) // m) * m


def cross_attention(hidden, encoder_outputs, w_t, bias, v, *,
                    vmem_limit_bytes=48 * 1024 * 1024):
    """hidden: (L, B, H); encoder_outputs: (S, B, 2H); w_t: (3H, H) == W^T;
    bias: (H,); v: (H,).  Returns softmax attention of shape (B, S)."""
    h0 = hidden[0]                                       # (B, H)
    enc = jnp.transpose(encoder_outputs, (1, 0, 2))      # (B, S, 2H)
    B, S, twoH = enc.shape
    H = h0.shape[1]

    # cat(hidden, enc) @ W^T  ==  hidden @ W^T[:H] + enc @ W^T[H:]
    w_h = w_t[:H, :]                                     # (H, H)
    w_e = w_t[H:, :]                                     # (2H, H)
    b2d = bias.reshape(1, H)
    v2d = v.reshape(1, H)

    # Lane-dense sequence axis and tile-aligned contraction axis.
    S_pad = _round_up(S, 128)
    K_pad = _round_up(twoH, 128)

    # ---- block_b from a VMEM budget (multiple of 8 -> full (8,128) stores) ----
    itemsize = jnp.dtype(enc.dtype).itemsize
    per_row = (2 * S_pad * K_pad * itemsize              # double-buffered enc tile
               + 2 * S_pad * H * 4                       # e_proj + energy (f32)
               + 4 * S_pad * 4)                          # att / exp / out slabs
    budget = vmem_limit_bytes // 2
    block_b = max(8, min(512, (budget // max(per_row, 1)) // 8 * 8))
    block_b = min(block_b, _round_up(B, 8))              # never exceed padded batch
    if B >= 16:                                          # >=2 grid steps: both v7x TCs busy
        block_b = min(block_b, max(8, (B // 2) // 8 * 8))
    B_pad = _round_up(B, block_b)
    # TODO(synk): if a single (block_b=8) tile ever exceeds the VMEM budget,
    # the sequence axis would also need tiling; not needed at these shapes.

    # Zero-pad inputs (no-op when already aligned).  Padded batch rows and
    # padded feature columns contribute nothing / are masked in-kernel.
    enc_p = jnp.pad(enc, ((0, B_pad - B), (0, S_pad - S), (0, K_pad - twoH)))
    h_p = jnp.pad(h0, ((0, B_pad - B), (0, 0)))
    we_p = jnp.pad(w_e, ((0, K_pad - twoH), (0, 0)))

    kernel = functools.partial(cross_attention_kernel, s_valid=S)

    out_padded = pl.pallas_call(
        kernel,
        out_shape=jax.ShapeDtypeStruct((B_pad, S_pad), jnp.float32),
        grid=(B_pad // block_b,),
        in_specs=[
            pl.BlockSpec((block_b, H), lambda i: (i, 0)),
            pl.BlockSpec((block_b, S_pad, K_pad), lambda i: (i, 0, 0)),
            pl.BlockSpec((H, H), lambda i: (0, 0)),
            pl.BlockSpec((K_pad, H), lambda i: (0, 0)),
            pl.BlockSpec((1, H), lambda i: (0, 0)),
            pl.BlockSpec((1, H), lambda i: (0, 0)),
        ],
        out_specs=pl.BlockSpec((block_b, S_pad), lambda i: (i, 0)),
        compiler_params=pltpu.CompilerParams(
            dimension_semantics=("parallel",),
            vmem_limit_bytes=vmem_limit_bytes,
        ),
    )(h_p, enc_p, w_h, we_p, b2d, v2d)

    return out_padded[:B, :S]


def cross_attention_ref(hidden, encoder_outputs, w_t, bias, v):
    """Pure-JAX reference mirroring the PyTorch forward (explicit concat)."""
    h0 = hidden[0]                                       # (B, H)
    enc = jnp.transpose(encoder_outputs, (1, 0, 2))      # (B, S, 2H)
    S = enc.shape[1]
    h_rep = jnp.broadcast_to(h0[:, None, :], (h0.shape[0], S, h0.shape[1]))
    x = jnp.concatenate([h_rep, enc], axis=2)            # (B, S, 3H)
    energy = jnp.tanh(jnp.einsum("bsk,kh->bsh", x, w_t) + bias)  # (B, S, H)
    att = jnp.einsum("bsh,h->bs", energy, v)             # (B, S)
    return jax.nn.softmax(att, axis=1)


def _run_case(key, L, B, S, H):
    k_hid, k_enc, k_w, k_b, k_v = jax.random.split(key, 5)
    hidden = jax.random.normal(k_hid, (L, B, H), dtype=jnp.float32)
    encoder_outputs = jax.random.normal(k_enc, (S, B, 2 * H), dtype=jnp.float32)
    w_t = jax.random.uniform(k_w, (3 * H, H), dtype=jnp.float32,
                             minval=-0.1, maxval=0.1)    # W^T of nn.Linear(3H, H)
    bias = jax.random.uniform(k_b, (H,), dtype=jnp.float32, minval=-0.1, maxval=0.1)
    v = jax.random.uniform(k_v, (H,), dtype=jnp.float32)  # torch.rand(H)

    out = jax.block_until_ready(cross_attention(hidden, encoder_outputs, w_t, bias, v))
    ref = cross_attention_ref(hidden, encoder_outputs, w_t, bias, v)

    assert out.shape == (B, S)
    assert jnp.allclose(out, ref, atol=1e-4, rtol=1e-4)
    assert jnp.allclose(jnp.sum(out, axis=1), jnp.ones((B,)), atol=1e-4)


if __name__ == "__main__":
    key = jax.random.PRNGKey(0)
    k0, k1 = jax.random.split(key)

    # Small case consistent with the module (n_hiddens[0]=32, batch=2, src_len=8).
    _run_case(k0, L=1, B=2, S=8, H=32)
    # Larger case exercising batch padding + a multi-step ("parallel") grid.
    _run_case(k1, L=1, B=20, S=136, H=32)

    print("KERNEL_OK")
</pallas_src>

<mosaic_0001>
module attributes {stable_mosaic.version = 11 : i64} {
  func.func @cross_attention_kernel(%arg0: i32, %arg1: memref<8x32xf32, #tpu.memory_space<vmem>>, %arg2: memref<8x128x128xf32, #tpu.memory_space<vmem>>, %arg3: memref<32x32xf32, #tpu.memory_space<vmem>>, %arg4: memref<128x32xf32, #tpu.memory_space<vmem>>, %arg5: memref<1x32xf32, #tpu.memory_space<vmem>>, %arg6: memref<1x32xf32, #tpu.memory_space<vmem>>, %arg7: memref<8x128xf32, #tpu.memory_space<vmem>>) attributes {dimension_semantics = [#tpu.dimension_semantics<parallel>], iteration_bounds = array<i64: 1>, scalar_prefetch = 0 : i64, scratch_operands = 0 : i64, tpu.core_type = #tpu.core_type<tc>, window_params = [{transform_indices = @transform_0, window_bounds = array<i64: 8, 32>}, {transform_indices = @transform_1, window_bounds = array<i64: 8, 128, 128>}, {pipeline_mode = #tpu.pipeline_mode<synchronous>, transform_indices = @transform_2, window_bounds = array<i64: 32, 32>}, {pipeline_mode = #tpu.pipeline_mode<synchronous>, transform_indices = @transform_3, window_bounds = array<i64: 128, 32>}, {pipeline_mode = #tpu.pipeline_mode<synchronous>, transform_indices = @transform_4, window_bounds = array<i64: 1, 32>}, {pipeline_mode = #tpu.pipeline_mode<synchronous>, transform_indices = @transform_5, window_bounds = array<i64: 1, 32>}, {transform_indices = @transform_6, window_bounds = array<i64: 8, 128>}]} {
    %c0 = arith.constant 0 : index
    %c0_0 = arith.constant 0 : index
    %0 = vector.load %arg1[%c0, %c0_0] : memref<8x32xf32, #tpu.memory_space<vmem>>, vector<8x32xf32>
    %c0_1 = arith.constant 0 : index
    %c0_2 = arith.constant 0 : index
    %1 = vector.load %arg3[%c0_1, %c0_2] : memref<32x32xf32, #tpu.memory_space<vmem>>, vector<32x32xf32>
    %cst = arith.constant dense<0.000000e+00> : vector<8x32xf32>
    %2 = tpu.matmul %0, %1, %cst {dimension_numbers = #tpu.dot_dimension_numbers<[1], [0], [0], [1], [0, 0, 1, 1], [], []>} : vector<8x32xf32>, vector<32x32xf32>, vector<8x32xf32> -> vector<8x32xf32>
    %c0_3 = arith.constant 0 : index
    %c0_4 = arith.constant 0 : index
    %3 = vector.load %arg5[%c0_3, %c0_4] : memref<1x32xf32, #tpu.memory_space<vmem>>, vector<1x32xf32>
    %4 = vector.broadcast %3 : vector<1x32xf32> to vector<8x32xf32>
    %5 = arith.addf %2, %4 : vector<8x32xf32>
    %c0_5 = arith.constant 0 : index
    %c0_6 = arith.constant 0 : index
    %c0_7 = arith.constant 0 : index
    %6 = vector.load %arg2[%c0_5, %c0_6, %c0_7] : memref<8x128x128xf32, #tpu.memory_space<vmem>>, vector<8x128x128xf32>
    %7 = vector.shape_cast %6 : vector<8x128x128xf32> to vector<1024x128xf32>
    %c0_8 = arith.constant 0 : index
    %c0_9 = arith.constant 0 : index
    %8 = vector.load %arg4[%c0_8, %c0_9] : memref<128x32xf32, #tpu.memory_space<vmem>>, vector<128x32xf32>
    %cst_10 = arith.constant dense<0.000000e+00> : vector<1024x32xf32>
    %9 = tpu.matmul %7, %8, %cst_10 {dimension_numbers = #tpu.dot_dimension_numbers<[1], [0], [0], [1], [0, 0, 1, 1], [], []>} : vector<1024x128xf32>, vector<128x32xf32>, vector<1024x32xf32> -> vector<1024x32xf32>
    %10 = vector.shape_cast %9 : vector<1024x32xf32> to vector<8x128x32xf32>
    %11 = vector.shape_cast %5 : vector<8x32xf32> to vector<8x1x32xf32>
    %12 = vector.broadcast %11 : vector<8x1x32xf32> to vector<8x128x32xf32>
    %13 = arith.addf %10, %12 : vector<8x128x32xf32>
    %14 = math.tanh %13 : vector<8x128x32xf32>
    %c0_11 = arith.constant 0 : index
    %c0_12 = arith.constant 0 : index
    %15 = vector.load %arg6[%c0_11, %c0_12] : memref<1x32xf32, #tpu.memory_space<vmem>>, vector<1x32xf32>
    %16 = vector.shape_cast %15 : vector<1x32xf32> to vector<1x1x32xf32>
    %17 = vector.broadcast %16 : vector<1x1x32xf32> to vector<8x128x32xf32>
    %18 = arith.mulf %14, %17 : vector<8x128x32xf32>
    %cst_13 = arith.constant dense<0.000000e+00> : vector<8x128xf32>
    %19 = vector.multi_reduction <add>, %18, %cst_13 [2] : vector<8x128x32xf32> to vector<8x128xf32>
    %20 = tpu.iota {dimensions = array<i32: 1>} : vector<8x128xi32>
    %c8_i32 = arith.constant 8 : i32
    %21 = vector.broadcast %c8_i32 : i32 to vector<8x128xi32>
    %22 = arith.cmpi slt, %20, %21 : vector<8x128xi32>
    %cst_14 = arith.constant -1.000000e+30 : f32
    %23 = vector.broadcast %cst_14 : f32 to vector<8x128xf32>
    %24 = arith.select %22, %19, %23 : vector<8x128xi1>, vector<8x128xf32>
    %cst_15 = arith.constant dense<0xFF800000> : vector<8xf32>
    %25 = vector.multi_reduction <maximumf>, %24, %cst_15 [1] : vector<8x128xf32> to vector<8xf32>
    %26 = vector.shape_cast %25 : vector<8xf32> to vector<8x1xf32>
    %27 = vector.broadcast %26 : vector<8x1xf32> to vector<8x128xf32>
    %28 = arith.subf %24, %27 : vector<8x128xf32>
    %29 = math.exp %28 : vector<8x128xf32>
    %cst_16 = arith.constant dense<0.000000e+00> : vector<8xf32>
    %30 = vector.multi_reduction <add>, %29, %cst_16 [1] : vector<8x128xf32> to vector<8xf32>
    %31 = vector.shape_cast %30 : vector<8xf32> to vector<8x1xf32>
    %32 = vector.broadcast %31 : vector<8x1xf32> to vector<8x128xf32>
    %33 = arith.divf %29, %32 : vector<8x128xf32>
    %c0_17 = arith.constant 0 : index
    %c0_18 = arith.constant 0 : index
    %34 = vector.load %arg7[%c0_17, %c0_18] : memref<8x128xf32, #tpu.memory_space<vmem>>, vector<8x128xf32>
    tpu.vector_store %arg7[%c0_17, %c0_18], %33 {strides = array<i32>} : memref<8x128xf32, #tpu.memory_space<vmem>>, vector<8x128xf32>,
    return
  }
  func.func @transform_0(%arg0: i32) -> (i32, i32) {
    %c0_i32 = arith.constant 0 : i32
    %c0_i32_0 = arith.constant 0 : i32
    return %arg0, %c0_i32 : i32, i32
  }
  func.func @transform_1(%arg0: i32) -> (i32, i32, i32) {
    %c0_i32 = arith.constant 0 : i32
    %c0_i32_0 = arith.constant 0 : i32
    %c0_i32_1 = arith.constant 0 : i32
    return %arg0, %c0_i32, %c0_i32_0 : i32, i32, i32
  }
  func.func @transform_2(%arg0: i32) -> (i32, i32) {
    %c0_i32 = arith.constant 0 : i32
    %c0_i32_0 = arith.constant 0 : i32
    %c0_i32_1 = arith.constant 0 : i32
    return %c0_i32, %c0_i32_0 : i32, i32
  }
  func.func @transform_3(%arg0: i32) -> (i32, i32) {
    %c0_i32 = arith.constant 0 : i32
    %c0_i32_0 = arith.constant 0 : i32
    %c0_i32_1 = arith.constant 0 : i32
    return %c0_i32, %c0_i32_0 : i32, i32
  }
  func.func @transform_4(%arg0: i32) -> (i32, i32) {
    %c0_i32 = arith.constant 0 : i32
    %c0_i32_0 = arith.constant 0 : i32
    %c0_i32_1 = arith.constant 0 : i32
    return %c0_i32, %c0_i32_0 : i32, i32
  }
  func.func @transform_5(%arg0: i32) -> (i32, i32) {
    %c0_i32 = arith.constant 0 : i32
    %c0_i32_0 = arith.constant 0 : i32
    %c0_i32_1 = arith.constant 0 : i32
    return %c0_i32, %c0_i32_0 : i32, i32
  }
  func.func @transform_6(%arg0: i32) -> (i32, i32) {
    %c0_i32 = arith.constant 0 : i32
    %c0_i32_0 = arith.constant 0 : i32
    return %arg0, %c0_i32 : i32, i32
  }
}

</mosaic_0001>

<bundles_post_ra>
// kernel: tpu_custom_call.1
= control target key start
LH: loop header
LB: loop body
LE: loop exit
PB: predicated region body
PF: predicated region fallthrough
CT: control target
= control target key end

     0   :  { %11 = vsyncpa [#allocation3], 0  ;;  %s3366_s0 = inlined_call_operand.vmem [shape: f32[8,32], index: 0, kind: input, shape index: {}]   ;;  %s3367_s1 = inlined_call_operand.hbm [shape: f32[8,128,128], index: 1, kind: input, shape index: {}]   ;;  %s3368_s2 = inlined_call_operand.vmem [shape: f32[32,32], index: 2, kind: input, shape index: {}]   ;;  %s3369_s3 = inlined_call_operand.vmem [shape: f32[128,32], index: 3, kind: input, shape index: {}]   ;;  %s3370_s4 = inlined_call_operand.vmem [shape: f32[1,32], index: 4, kind: input, shape index: {}]   ;;  %s3371_s5 = inlined_call_operand.vmem [shape: f32[1,32], index: 5, kind: input, shape index: {}]   ;;  %s3372_s6 = inlined_call_operand.hbm [shape: f32[8,128], index: 6, kind: output, shape index: {}]  }
   0x1   :  { %12 = vsyncpa [#allocation4], 0  ;;  %s19_s23 = sshll.u32 %s3367_s1, 4  ;;  %s2248_s24 = smov [#allocation2]   ;;  %s20_s23 = int_to_ptr.hbm [resolvable:$true] %s19_s23 }
   0x2   :  { %s21_s25 = sshll.u32 %s2248_s24, 4  ;;  %s2249_s26 = smov 128   ;;  %s22_s25 = int_to_ptr.vmem [resolvable:$true] %s21_s25 }
   0x3   :  { %s2250_s27 = smov 8  }
   0x4   :  { %27 = dma.hbm_to_vmem [thread:$0]  %s20_s23, 16384, %s22_s25, [#allocation3], %s2249_s26, %s2249_s26, %s2250_s27  }
   0x5   :  { %2244 = dma.done.wait [#allocation3], 16384  }
   0x6   :  { %2245 = vsyncadd [#allocation3], 4294950912  ;;  %v44_v0 = vld [vmem:[%s3368_s2 + $0x18] sm:$0xff]  ;;  %v43_v2 = vld [vmem:[%s3368_s2 + $0x10] sm:$0xff]  ;;  %vm49_vm0 = vcmask 261120   ;;  %vm1548_vm1 = vcmask 130112  }
   0x7   :  { %v216_v1 = vld [vmem:[%s3369_s3 + $0x78] sm:$0xff]  ;;  %65 = vmatpush.msra.mxu1 %v44_v0  ;;  %v215_v3 = vld [vmem:[%s3369_s3 + $0x70] sm:$0xff]  ;;  %v42_v4 = vld [vmem:[%s3368_s2 + $0x8] sm:$0xff]  ;;  %vm1552_vm2 = vcmask 195712   ;;  %vm1556_vm3 = vcmask 261312   ;;  %vm1560_vm4 = vcmask 326912  }
   0x8   :  { %217 = vmatpush.msra.mxu0 %v216_v1  ;;  %1881 = vmatpush.msra.mxu2 %v216_v1  ;;  %v214_v5 = vld [vmem:[%s3369_s3 + $0x68] sm:$0xff]  ;;  %v41_v6 = vld [vmem:[%s3368_s2] sm:$0xff]  ;;  %v212_v8 = vld [vmem:[%s3369_s3 + $0x58] sm:$0xff]  ;;  %vm1564_vm5 = vcmask 392512   ;;  %vm1568_vm6 = vcmask 458112   ;;  %vm1572_vm7 = vcmask 523712  }
   0x9   :  { %1882 = vmatpush.msra.mxu3 %v216_v1  ;;  %66 = vmatpush.msra.mxu1 %v43_v2  ;;  %v213_v7 = vld [vmem:[%s3369_s3 + $0x60] sm:$0xff]  ;;  %v211_v9 = vld [vmem:[%s3369_s3 + $0x50] sm:$0xff]  ;;  %v210_v10 = vld [vmem:[%s3369_s3 + $0x48] sm:$0xff]  ;;  %vm1576_vm8 = vcmask 589312   ;;  %vm1580_vm9 = vcmask 654912   ;;  %vm1584_vm10 = vcmask 720512  }
   0xa   :  { %218 = vmatpush.msra.mxu0 %v215_v3  ;;  %1884 = vmatpush.msra.mxu2 %v215_v3  ;;  %v209_v11 = vld [vmem:[%s3369_s3 + $0x40] sm:$0xff]  ;;  %v208_v12 = vld [vmem:[%s3369_s3 + $0x38] sm:$0xff]  ;;  %v207_v13 = vld [vmem:[%s3369_s3 + $0x30] sm:$0xff]  ;;  %vm1588_vm11 = vcmask 786112   ;;  %vm1592_vm12 = vcmask 851712   ;;  %vm1596_vm13 = vcmask 917312  }
   0xb   :  { %1885 = vmatpush.msra.mxu3 %v215_v3  ;;  %67 = vmatpush.msra.mxu1 %v42_v4  ;;  %v206_v14 = vld [vmem:[%s3369_s3 + $0x28] sm:$0xff]  ;;  %v205_v15 = vld [vmem:[%s3369_s3 + $0x20] sm:$0xff]  ;;  %v204_v16 = vld [vmem:[%s3369_s3 + $0x18] sm:$0xff]  ;;  %vm1600_vm14 = vcmask 982912   ;;  %vm1604_vm15 = vcmask 1048512   ;;  %s1869_s26 = sshll.u32 %s3372_s6, 4  ;;  %s1870_s26 = int_to_ptr.hbm [resolvable:$true] %s1869_s26 }
   0xc   :  { %219 = vmatpush.msra.mxu0 %v214_v5  ;;  %1887 = vmatpush.msra.mxu2 %v214_v5  ;;  %v203_v17 = vld [vmem:[%s3369_s3 + $0x10] sm:$0xff]  ;;  %v40_v18 = vld [vmem:[%s3366_s0] sm:$0xff]  ;;  %v202_v19 = vld [vmem:[%s3369_s3 + $0x8] sm:$0xff] }
   0xd   :  { %1888 = vmatpush.msra.mxu3 %v214_v5  ;;  %68 = vmatpush.msra.mxu1 %v41_v6  ;;  %v201_v20 = vld [vmem:[%s3369_s3] sm:$0xff]  ;;  %v136_v22 = vld [vmem:[#allocation2 + $0x1f8] sm:$0xff]  ;;  %v74_v25 = vld [vmem:[#allocation2 + $0x8] sm:$0xff] }
   0xe   :  { %220 = vmatpush.msra.mxu0 %v213_v7  ;;  %1890 = vmatpush.msra.mxu2 %v213_v7  ;;  %v73_v21 = vld [vmem:[#allocation2] sm:$0xff]  ;;  %v168_v23 = vld [vmem:[#allocation2 + $0x2f8] sm:$0xff]  ;;  %v106_v28 = vld [vmem:[#allocation2 + $0x108] sm:$0xff] }
   0xf   :  { %1891 = vmatpush.msra.mxu3 %v213_v7  ;;  %1880 = vmatpush.msrb.mxu1 %v216_v1  ;;  %v105_v24 = vld [vmem:[#allocation2 + $0x100] sm:$0xff]  ;;  %v75_v29 = vld [vmem:[#allocation2 + $0x10] sm:$0xff]  ;;  %v138_v30 = vld [vmem:[#allocation2 + $0x208] sm:$0xff] }
  0x10   :  { %221 = vmatpush.msra.mxu0 %v212_v8  ;;  %1893 = vmatpush.msra.mxu2 %v212_v8  ;;  %v137_v26 = vld [vmem:[#allocation2 + $0x200] sm:$0xff]  ;;  %v170_v31 = vld [vmem:[#allocation2 + $0x308] sm:$0xff]  ;;  %v107_v32 = vld [vmem:[#allocation2 + $0x110] sm:$0xff] }
  0x11   :  { %1894 = vmatpush.msra.mxu3 %v212_v8  ;;  %1883 = vmatpush.msrb.mxu1 %v215_v3  ;;  %v169_v27 = vld [vmem:[#allocation2 + $0x300] sm:$0xff]  ;;  %v76_v33 = vld [vmem:[#allocation2 + $0x18] sm:$0xff]  ;;  %v139_v34 = vld [vmem:[#allocation2 + $0x210] sm:$0xff] }
  0x12   :  { %222 = vmatpush.msra.mxu0 %v211_v9  ;;  %1896 = vmatpush.msra.mxu2 %v211_v9  ;;  %v171_v35 = vld [vmem:[#allocation2 + $0x310] sm:$0xff]  ;;  %v108_v36 = vld [vmem:[#allocation2 + $0x118] sm:$0xff]  ;;  %v77_v37 = vld [vmem:[#allocation2 + $0x20] sm:$0xff] }
  0x13   :  { %1897 = vmatpush.msra.mxu3 %v211_v9  ;;  %1886 = vmatpush.msrb.mxu1 %v214_v5  ;;  %v140_v38 = vld [vmem:[#allocation2 + $0x218] sm:$0xff]  ;;  %v109_v40 = vld [vmem:[#allocation2 + $0x120] sm:$0xff]  ;;  %v78_v41 = vld [vmem:[#allocation2 + $0x28] sm:$0xff] }
  0x14   :  { %223 = vmatpush.msra.mxu0 %v210_v10  ;;  %1899 = vmatpush.msra.mxu2 %v210_v10  ;;  %v172_v39 = vld [vmem:[#allocation2 + $0x318] sm:$0xff]  ;;  %v141_v42 = vld [vmem:[#allocation2 + $0x220] sm:$0xff]  ;;  %v110_v44 = vld [vmem:[#allocation2 + $0x128] sm:$0xff] }
  0x15   :  { %1900 = vmatpush.msra.mxu3 %v210_v10  ;;  %1889 = vmatpush.msrb.mxu1 %v213_v7  ;;  %v173_v43 = vld [vmem:[#allocation2 + $0x320] sm:$0xff]  ;;  %v79_v45 = vld [vmem:[#allocation2 + $0x30] sm:$0xff]  ;;  %v142_v46 = vld [vmem:[#allocation2 + $0x228] sm:$0xff] }
  0x16   :  { %224 = vmatpush.msra.mxu0 %v209_v11  ;;  %1902 = vmatpush.msra.mxu2 %v209_v11  ;;  %v174_v47 = vld [vmem:[#allocation2 + $0x328] sm:$0xff]  ;;  %v111_v48 = vld [vmem:[#allocation2 + $0x130] sm:$0xff]  ;;  %v80_v49 = vld [vmem:[#allocation2 + $0x38] sm:$0xff] }
  0x17   :  { %1903 = vmatpush.msra.mxu3 %v209_v11  ;;  %1892 = vmatpush.msrb.mxu1 %v212_v8  ;;  %v143_v50 = vld [vmem:[#allocation2 + $0x230] sm:$0xff]  ;;  %v112_v52 = vld [vmem:[#allocation2 + $0x138] sm:$0xff]  ;;  %v81_v53 = vld [vmem:[#allocation2 + $0x40] sm:$0xff] }
  0x18   :  { %225 = vmatpush.msra.mxu0 %v208_v12  ;;  %1905 = vmatpush.msra.mxu2 %v208_v12  ;;  %v175_v51 = vld [vmem:[#allocation2 + $0x330] sm:$0xff]  ;;  %v144_v54 = vld [vmem:[#allocation2 + $0x238] sm:$0xff]  ;;  %v113_v56 = vld [vmem:[#allocation2 + $0x140] sm:$0xff] }
  0x19   :  { %1906 = vmatpush.msra.mxu3 %v208_v12  ;;  %1895 = vmatpush.msrb.mxu1 %v211_v9  ;;  %v176_v55 = vld [vmem:[#allocation2 + $0x338] sm:$0xff]  ;;  %v82_v57 = vld [vmem:[#allocation2 + $0x48] sm:$0xff]  ;;  %v145_v58 = vld [vmem:[#allocation2 + $0x240] sm:$0xff] }
  0x1a   :  { %226 = vmatpush.msra.mxu0 %v207_v13  ;;  %1908 = vmatpush.msra.mxu2 %v207_v13  ;;  %v177_v59 = vld [vmem:[#allocation2 + $0x340] sm:$0xff]  ;;  %v114_v60 = vld [vmem:[#allocation2 + $0x148] sm:$0xff]  ;;  %v83_v61 = vld [vmem:[#allocation2 + $0x50] sm:$0xff] }
  0x1b   :  { %1909 = vmatpush.msra.mxu3 %v207_v13  ;;  %1898 = vmatpush.msrb.mxu1 %v210_v10  ;;  %v146_v62 = vld [vmem:[#allocation2 + $0x248] sm:$0xff]  ;;  %v115_v0 = vld [vmem:[#allocation2 + $0x150] sm:$0xff]  ;;  %v84_v1 = vld [vmem:[#allocation2 + $0x58] sm:$0xff] }
  0x1c   :  { %227 = vmatpush.msra.mxu0 %v206_v14  ;;  %1911 = vmatpush.msra.mxu2 %v206_v14  ;;  %v178_v63 = vld [vmem:[#allocation2 + $0x348] sm:$0xff]  ;;  %v147_v2 = vld [vmem:[#allocation2 + $0x250] sm:$0xff]  ;;  %v116_v4 = vld [vmem:[#allocation2 + $0x158] sm:$0xff] }
  0x1d   :  { %1912 = vmatpush.msra.mxu3 %v206_v14  ;;  %1901 = vmatpush.msrb.mxu1 %v209_v11  ;;  %v179_v3 = vld [vmem:[#allocation2 + $0x350] sm:$0xff]  ;;  %v85_v5 = vld [vmem:[#allocation2 + $0x60] sm:$0xff]  ;;  %v148_v6 = vld [vmem:[#allocation2 + $0x258] sm:$0xff] }
  0x1e   :  { %228 = vmatpush.msra.mxu0 %v205_v15  ;;  %1914 = vmatpush.msra.mxu2 %v205_v15  ;;  %v180_v7 = vld [vmem:[#allocation2 + $0x358] sm:$0xff]  ;;  %v117_v8 = vld [vmem:[#allocation2 + $0x160] sm:$0xff]  ;;  %v86_v9 = vld [vmem:[#allocation2 + $0x68] sm:$0xff] }
  0x1f   :  { %1915 = vmatpush.msra.mxu3 %v205_v15  ;;  %1904 = vmatpush.msrb.mxu1 %v208_v12  ;;  %v149_v10 = vld [vmem:[#allocation2 + $0x260] sm:$0xff]  ;;  %v118_v12 = vld [vmem:[#allocation2 + $0x168] sm:$0xff] }
  0x20   :  { %229 = vmatpush.msra.mxu0 %v204_v16  ;;  %1917 = vmatpush.msra.mxu2 %v204_v16  ;;  %v181_v11 = vld [vmem:[#allocation2 + $0x360] sm:$0xff] }
  0x21   :  { %1918 = vmatpush.msra.mxu3 %v204_v16  ;;  %1907 = vmatpush.msrb.mxu1 %v207_v13  ;;  %v87_v13 = vld [vmem:[#allocation2 + $0x70] sm:$0xff] }
  0x22   :  { %230 = vmatpush.msra.mxu0 %v203_v17  ;;  %1920 = vmatpush.msra.mxu2 %v203_v17 }
  0x23   :  { %1921 = vmatpush.msra.mxu3 %v203_v17  ;;  %1879 = vmatmul.msk.f32.vlgmr.msra.gmra.mxu1 %vm49_vm0, %v40_v18  ;;  %v151_v18 = vld [vmem:[#allocation2 + $0x270] sm:$0xff] }
  0x24   :  { %231 = vmatpush.msra.mxu0 %v202_v19  ;;  %1910 = vmatpush.msrb.mxu1 %v206_v14  ;;  %v150_v14 = vld [vmem:[#allocation2 + $0x268] sm:$0xff] }
  0x25   :  { %1923 = vmatpush.msra.mxu2 %v202_v19  ;;  %1924 = vmatpush.msra.mxu3 %v202_v19 }
  0x26   :  { %232 = vmatpush.msra.mxu0 %v201_v20  ;;  %1913 = vmatpush.msrb.mxu1 %v205_v15  ;;  %v182_v15 = vld [vmem:[#allocation2 + $0x368] sm:$0xff] }
  0x27   :  { %1926 = vmatpush.msra.mxu2 %v201_v20  ;;  %1927 = vmatpush.msra.mxu3 %v201_v20 }
  0x28   :  { %233 = vmatmul.f32.vlgmr.msra.gmra.mxu0 %v73_v21  ;;  %1916 = vmatpush.msrb.mxu1 %v204_v16  ;;  %v119_v16 = vld [vmem:[#allocation2 + $0x170] sm:$0xff] }
  0x29   :  { %422 = vmatmul.f32.vlgmr.msra.gmra.mxu2 %v136_v22  ;;  %518 = vmatmul.f32.vlgmr.msra.gmra.mxu3 %v168_v23 }
  0x2a   :  { %1919 = vmatpush.msrb.mxu1 %v203_v17  ;;  %v88_v17 = vld [vmem:[#allocation2 + $0x78] sm:$0xff] }
  0x2c   :  { %1922 = vmatpush.msrb.mxu1 %v202_v19  ;;  %v1932_v19 = vld [vmem:[%s3370_s4] ss:$0 sm:$0xff] }
  0x2e   :  { %1925 = vmatpush.msrb.mxu1 %v201_v20  ;;  %v183_v20 = vld [vmem:[#allocation2 + $0x370] sm:$0xff] }
  0x2f   :  { %329 = vmatmul.f32.vlgmr.msrb.gmra.mxu1 %v105_v24 }
  0x30   :  { %236 = vmatmul.f32.gmra.mxu0 %v74_v25 }
  0x31   :  { %425 = vmatmul.f32.gmra.mxu2 %v137_v26  ;;  %521 = vmatmul.f32.gmra.mxu3 %v169_v27  ;;  %v120_v26 = vld [vmem:[#allocation2 + $0x178] sm:$0xff]  ;;  %v89_v27 = vld [vmem:[#allocation2 + $0x80] sm:$0xff] }
  0x37   :  { %332 = vmatmul.f32.gmra.mxu1 %v106_v28 }
  0x38   :  { %239 = vmatmul.f32.gmra.mxu0 %v75_v29  ;;  %v152_v29 = vld [vmem:[#allocation2 + $0x278] sm:$0xff] }
  0x39   :  { %428 = vmatmul.f32.gmra.mxu2 %v138_v30  ;;  %524 = vmatmul.f32.gmra.mxu3 %v170_v31 }
  0x3f   :  { %335 = vmatmul.f32.gmra.mxu1 %v107_v32  ;;  %v184_v32 = vld [vmem:[#allocation2 + $0x378] sm:$0xff] }
  0x40   :  { %242 = vmatmul.f32.gmra.mxu0 %v76_v33 }
  0x41   :  { %431 = vmatmul.f32.gmra.mxu2 %v139_v34  ;;  %527 = vmatmul.f32.gmra.mxu3 %v171_v35 }
  0x47   :  { %338 = vmatmul.f32.gmra.mxu1 %v108_v36 }
  0x48   :  { %245 = vmatmul.f32.gmra.mxu0 %v77_v37  ;;  %v2375_v37 = vld [vmem:[%s3371_s5] ss:$0 sm:$0xff] }
  0x49   :  { %434 = vmatmul.f32.gmra.mxu2 %v140_v38  ;;  %530 = vmatmul.f32.gmra.mxu3 %v172_v39 }
  0x4f   :  { %341 = vmatmul.f32.gmra.mxu1 %v109_v40 }
  0x50   :  { %248 = vmatmul.f32.gmra.mxu0 %v78_v41 }
  0x51   :  { %437 = vmatmul.f32.gmra.mxu2 %v141_v42  ;;  %533 = vmatmul.f32.gmra.mxu3 %v173_v43  ;;  %v121_v42 = vld [vmem:[#allocation2 + $0x180] sm:$0xff]  ;;  %v90_v43 = vld [vmem:[#allocation2 + $0x88] sm:$0xff] }
  0x57   :  { %344 = vmatmul.f32.gmra.mxu1 %v110_v44 }
  0x58   :  { %251 = vmatmul.f32.gmra.mxu0 %v79_v45 }
  0x59   :  { %440 = vmatmul.f32.gmra.mxu2 %v142_v46  ;;  %536 = vmatmul.f32.gmra.mxu3 %v174_v47  ;;  %v153_v46 = vld [vmem:[#allocation2 + $0x280] sm:$0xff] }
  0x5f   :  { %347 = vmatmul.f32.gmra.mxu1 %v111_v48 }
  0x60   :  { %254 = vmatmul.f32.gmra.mxu0 %v80_v49 }
  0x61   :  { %443 = vmatmul.f32.gmra.mxu2 %v143_v50  ;;  %539 = vmatmul.f32.gmra.mxu3 %v175_v51  ;;  %v185_v50 = vld [vmem:[#allocation2 + $0x380] sm:$0xff] }
  0x67   :  { %350 = vmatmul.f32.gmra.mxu1 %v112_v52 }
  0x68   :  { %257 = vmatmul.f32.gmra.mxu0 %v81_v53 }
  0x69   :  { %446 = vmatmul.f32.gmra.mxu2 %v144_v54  ;;  %542 = vmatmul.f32.gmra.mxu3 %v176_v55 }
  0x6f   :  { %353 = vmatmul.f32.gmra.mxu1 %v113_v56 }
  0x70   :  { %260 = vmatmul.f32.gmra.mxu0 %v82_v57 }
  0x71   :  { %449 = vmatmul.f32.gmra.mxu2 %v145_v58  ;;  %545 = vmatmul.f32.gmra.mxu3 %v177_v59 }
  0x77   :  { %356 = vmatmul.f32.gmra.mxu1 %v114_v60 }
  0x78   :  { %263 = vmatmul.f32.gmra.mxu0 %v83_v61  ;;  %v122_v61 = vld [vmem:[#allocation2 + $0x188] sm:$0xff] }
  0x79   :  { %452 = vmatmul.f32.gmra.mxu2 %v146_v62  ;;  %548 = vmatmul.f32.gmra.mxu3 %v178_v63  ;;  %v91_v62 = vld [vmem:[#allocation2 + $0x90] sm:$0xff] }
  0x7f   :  { %359 = vmatmul.f32.gmra.mxu1 %v115_v0  ;;  %v154_v0 = vld [vmem:[#allocation2 + $0x288] sm:$0xff] }
  0x80   :  { %266 = vmatmul.f32.gmra.mxu0 %v84_v1 }
  0x81   :  { %455 = vmatmul.f32.gmra.mxu2 %v147_v2  ;;  %551 = vmatmul.f32.gmra.mxu3 %v179_v3 }
  0x87   :  { %362 = vmatmul.f32.gmra.mxu1 %v116_v4  ;;  %v186_v4 = vld [vmem:[#allocation2 + $0x388] sm:$0xff] }
  0x88   :  { %269 = vmatmul.f32.gmra.mxu0 %v85_v5 }
  0x89   :  { %458 = vmatmul.f32.gmra.mxu2 %v148_v6  ;;  %554 = vmatmul.f32.gmra.mxu3 %v180_v7 }
  0x8f   :  { %365 = vmatmul.f32.gmra.mxu1 %v117_v8 }
  0x90   :  { %272 = vmatmul.f32.gmra.mxu0 %v86_v9 }
  0x91   :  { %461 = vmatmul.f32.gmra.mxu2 %v149_v10  ;;  %557 = vmatmul.f32.gmra.mxu3 %v181_v11 }
  0x97   :  { %368 = vmatmul.f32.gmra.mxu1 %v118_v12 }
  0x98   :  { %275 = vmatmul.f32.gmra.mxu0 %v87_v13 }
  0x99   :  { %464 = vmatmul.f32.gmra.mxu2 %v150_v14  ;;  %560 = vmatmul.f32.gmra.mxu3 %v182_v15 }
  0x9f   :  { %371 = vmatmul.f32.gmra.mxu1 %v119_v16 }
  0xa0   :  { %278 = vmatmul.f32.gmra.mxu0 %v88_v17  ;;  %v70_v21 = vpop.f32.mrf.mxu1  ;;  %v123_v17 = vld [vmem:[#allocation2 + $0x190] sm:$0xff] }
  0xa1   :  { %467 = vmatmul.f32.gmra.mxu2 %v151_v18  ;;  %563 = vmatmul.f32.gmra.mxu3 %v183_v20  ;;  %v2357_v22 = vadd.f32 %v1932_v19, %v70_v21  ;;  %v92_v18 = vld [vmem:[#allocation2 + $0x98] sm:$0xff]  ;;  %v155_v20 = vld [vmem:[#allocation2 + $0x290] sm:$0xff] }
  0xa3   :  { %v621_v23 = vrot.slane %v2357_v22, 3  ;;  %v2361_v24 = vperm.slane %v2357_v22, 0  ;;  %v620_v28 = vrot.slane %v2357_v22, 2  ;;  %v623_v30 = vrot.slane %v2357_v22, 5 }
  0xa4   :  { %v622_v38 = vrot.slane %v2357_v22, 4  ;;  %v624_v48 = vrot.slane %v2357_v22, 6 }
  0xa5   :  { %v234_v25 = vpop.f32.mrf.mxu0  ;;  %v2366_v33 = vperm.slane %v621_v23, 0  ;;  %v2368_v34 = vperm.slane %v620_v28, 0  ;;  %v2370_v35 = vperm.slane %v623_v30, 0 }
  0xa6   :  { %v642_v31 = vadd.f32 %v2361_v24, %v234_v25  ;;  %v2383_v52 = vperm.slane %v622_v38, 0  ;;  %v2387_v55 = vperm.slane %v624_v48, 0 }
  0xa7   :  { %374 = vmatmul.f32.gmra.mxu1 %v120_v26  ;;  %v187_v26 = vld [vmem:[#allocation2 + $0x390] sm:$0xff] }
  0xa8   :  { %281 = vmatmul.f32.gmra.mxu0 %v89_v27  ;;  %1934 = vtanh.f32 %v642_v31 }
  0xa9   :  { %470 = vmatmul.f32.gmra.mxu2 %v152_v29  ;;  %566 = vmatmul.f32.gmra.mxu3 %v184_v32 }
  0xac   :  { %v423_v36 = vpop.f32.mrf.mxu2  ;;  %v519_v40 = vpop.f32.mrf.mxu3 }
  0xad   :  { %v705_v39 = vadd.f32 %v2366_v33, %v423_v36  ;;  %v330_v41 = vpop.f32.mrf.mxu1  ;;  %v237_v45 = vpop.f32.mrf.mxu0  ;;  %v737_v49 = vadd.f32 %v2370_v35, %v519_v40 }
  0xae   :  { %v674_v44 = vadd.f32 %v2368_v34, %v330_v41  ;;  %v1935_v47 = vpop.eup %1934  ;;  %v643_v53 = vadd.f32 %v2361_v24, %v237_v45 }
  0xaf   :  { %1936 = vtanh.f32 %v705_v39  ;;  %377 = vmatmul.f32.gmra.mxu1 %v121_v42  ;;  %v902_v51 = vmul.f32 %v1935_v47, %v2375_v37 }
  0xb0   :  { %284 = vmatmul.f32.gmra.mxu0 %v90_v43  ;;  %1938 = vtanh.f32 %v674_v44  ;;  %v124_v43 = vld [vmem:[#allocation2 + $0x198] sm:$0xff]  ;;  %v93_v44 = vld [vmem:[#allocation2 + $0xa0] sm:$0xff] }
  0xb1   :  { %473 = vmatmul.f32.gmra.mxu2 %v153_v46  ;;  %569 = vmatmul.f32.gmra.mxu3 %v185_v50  ;;  %v1030_v54 = vsel %vm49_vm0, %v902_v51, 0.0  ;;  %1940 = vtanh.f32 %v737_v49  ;;  %v156_v46 = vld [vmem:[#allocation2 + $0x298] sm:$0xff] }
  0xb2   :  { %1031 = vadd.xlane.f32.xlu0 %v1030_v54  ;;  %1942 = vtanh.f32 %v643_v53  ;;  %v188_v50 = vld [vmem:[#allocation2 + $0x398] sm:$0xff] }
  0xb4   :  { %v426_v56 = vpop.f32.mrf.mxu2  ;;  %v522_v59 = vpop.f32.mrf.mxu3 }
  0xb5   :  { %v1937_v57 = vpop.eup %1936  ;;  %v706_v58 = vadd.f32 %v2383_v52, %v426_v56  ;;  %v333_v60 = vpop.f32.mrf.mxu1  ;;  %v738_v3 = vadd.f32 %v2387_v55, %v522_v59 }
  0xb6   :  { %v240_v63 = vpop.f32.mrf.mxu0  ;;  %v965_v1 = vmul.f32 %v1937_v57, %v2375_v37  ;;  %v1939_v2 = vpop.eup %1938  ;;  %v675_v7 = vadd.f32 %v2368_v34, %v333_v60 }
  0xb7   :  { %1944 = vtanh.f32 %v706_v58  ;;  %380 = vmatmul.f32.gmra.mxu1 %v122_v61  ;;  %v934_v5 = vmul.f32 %v1939_v2, %v2375_v37  ;;  %v1941_v6 = vpop.eup %1940  ;;  %v644_v25 = vadd.f32 %v2361_v24, %v240_v63 }
  0xb8   :  { %287 = vmatmul.f32.gmra.mxu0 %v91_v62  ;;  %v1219_v9 = vsel %vm49_vm0, %v965_v1, 0.0  ;;  %v1943_v10 = vpop.eup %1942  ;;  %1946 = vtanh.f32 %v738_v3  ;;  %v997_v12 = vmul.f32 %v1941_v6, %v2375_v37  ;;  %v94_v1 = vld [vmem:[#allocation2 + $0xa8] sm:$0xff] }
  0xb9   :  { %476 = vmatmul.f32.gmra.mxu2 %v154_v0  ;;  %572 = vmatmul.f32.gmra.mxu3 %v186_v4  ;;  %v1126_v8 = vsel %vm49_vm0, %v934_v5, 0.0  ;;  %1948 = vtanh.f32 %v675_v7  ;;  %v903_v23 = vmul.f32 %v1943_v10, %v2375_v37  ;;  %v125_v0 = vld [vmem:[#allocation2 + $0x1a0] sm:$0xff] }
  0xba   :  { %1127 = vadd.xlane.f32.xlu2 %v1126_v8  ;;  %1220 = vadd.xlane.f32.xlu0 %v1219_v9  ;;  %v1315_v28 = vsel %vm49_vm0, %v997_v12, 0.0  ;;  %v157_v4 = vld [vmem:[#allocation2 + $0x2a0] sm:$0xff] }
  0xbb   :  { %v1033_v31 = vsel %vm49_vm0, %v903_v23, 0.0  ;;  %v189_v8 = vld [vmem:[#allocation2 + $0x3a0] sm:$0xff]  ;;  %v158_v23 = vld [vmem:[#allocation2 + $0x2a8] sm:$0xff] }
  0xbc   :  { %v429_v11 = vpop.f32.mrf.mxu2  ;;  %v525_v15 = vpop.f32.mrf.mxu3 }
  0xbd   :  { %v1945_v13 = vpop.eup %1944  ;;  %v707_v14 = vadd.f32 %v2383_v52, %v429_v11  ;;  %v336_v16 = vpop.f32.mrf.mxu1  ;;  %v739_v30 = vadd.f32 %v2387_v55, %v525_v15 }
  0xbe   :  { %v2398_v19 = vpop.f32.mrf.mxu0  ;;  %v966_v21 = vmul.f32 %v1945_v13, %v2375_v37  ;;  %v1947_v29 = vpop.eup %1946  ;;  %v676_v49 = vadd.f32 %v2368_v34, %v336_v16 }
  0xbf   :  { %1950 = vtanh.f32 %v707_v14  ;;  %383 = vmatmul.f32.gmra.mxu1 %v123_v17  ;;  %v1949_v32 = vpop.eup %1948  ;;  %v998_v38 = vmul.f32 %v1947_v29, %v2375_v37  ;;  %v645_v7 = vadd.f32 %v2361_v24, %v2398_v19  ;;  %v126_v19 = vld [vmem:[#allocation2 + $0x1a8] sm:$0xff] }
  0xc0   :  { %290 = vmatmul.f32.gmra.mxu0 %v92_v18  ;;  %v1222_v27 = vsel %vm49_vm0, %v966_v21, 0.0  ;;  %1952 = vtanh.f32 %v644_v25  ;;  %v935_v48 = vmul.f32 %v1949_v32, %v2375_v37  ;;  %v190_v29 = vld [vmem:[#allocation2 + $0x3a8] sm:$0xff] }
  0xc1   :  { %479 = vmatmul.f32.gmra.mxu2 %v155_v20  ;;  %1223 = vadd.xlane.f32.xlu1 %v1222_v27  ;;  %1954 = vtanh.f32 %v739_v30  ;;  %v1318_v51 = vsel %vm49_vm0, %v998_v38, 0.0  ;;  %v95_v20 = vld [vmem:[#allocation2 + $0xb0] sm:$0xff] }
  0xc2   :  { %575 = vmatmul.f32.gmra.mxu3 %v187_v26  ;;  %1316 = vadd.xlane.f32.xlu2 %v1315_v28  ;;  %v1129_v57 = vsel %vm49_vm0, %v935_v48, 0.0 }
  0xc3   :  { %1034 = vadd.xlane.f32.xlu0 %v1033_v31 }
  0xc4   :  { %v432_v36 = vpop.f32.mrf.mxu2  ;;  %v2409_v41 = vpop.f32.mrf.mxu3 }
  0xc5   :  { %v1951_v39 = vpop.eup %1950  ;;  %v708_v40 = vadd.f32 %v2383_v52, %v432_v36  ;;  %v339_v42 = vpop.f32.mrf.mxu1  ;;  %v740_v27 = vadd.f32 %v2387_v55, %v2409_v41 }
  0xc6   :  { %v246_v45 = vpop.f32.mrf.mxu0  ;;  %v967_v47 = vmul.f32 %v1951_v39, %v2375_v37  ;;  %v1953_v54 = vpop.eup %1952  ;;  %v677_v56 = vadd.f32 %v2368_v34, %v339_v42 }
  0xc7   :  { %1956 = vtanh.f32 %v708_v40  ;;  %386 = vmatmul.f32.gmra.mxu1 %v124_v43  ;;  %v1955_v58 = vpop.eup %1954  ;;  %v904_v60 = vmul.f32 %v1953_v54, %v2375_v37  ;;  %v646_v11 = vadd.f32 %v2361_v24, %v246_v45 }
  0xc8   :  { %293 = vmatmul.f32.gmra.mxu0 %v93_v44  ;;  %v1225_v53 = vsel %vm49_vm0, %v967_v47, 0.0  ;;  %1958 = vtanh.f32 %v676_v49  ;;  %v999_v5 = vmul.f32 %v1955_v58, %v2375_v37  ;;  %v96_v47 = vld [vmem:[#allocation2 + $0xb8] sm:$0xff]  ;;  %v159_v49 = vld [vmem:[#allocation2 + $0x2b0] sm:$0xff] }
  0xc9   :  { %482 = vmatmul.f32.gmra.mxu2 %v156_v46  ;;  %1319 = vadd.xlane.f32.xlu1 %v1318_v51  ;;  %1960 = vtanh.f32 %v677_v56  ;;  %v1036_v9 = vsel %vm49_vm0, %v904_v60, 0.0  ;;  %v127_v46 = vld [vmem:[#allocation2 + $0x1b0] sm:$0xff] }
  0xca   :  { %578 = vmatmul.f32.gmra.mxu3 %v188_v50  ;;  %1226 = vadd.xlane.f32.xlu2 %v1225_v53  ;;  %v1321_v12 = vsel %vm49_vm0, %v999_v5, 0.0  ;;  %v191_v53 = vld [vmem:[#allocation2 + $0x3b0] sm:$0xff]  ;;  %v97_v5 = vld [vmem:[#allocation2 + $0xc0] sm:$0xff] }
  0xcb   :  { %1130 = vadd.xlane.f32.xlu0 %v1129_v57 }
  0xcc   :  { %v2418_v59 = vpop.f32.mrf.mxu2  ;;  %v531_v62 = vpop.f32.mrf.mxu3 }
  0xcd   :  { %v1957_v61 = vpop.eup %1956  ;;  %v342_v63 = vpop.f32.mrf.mxu1  ;;  %v741_v36 = vadd.f32 %v2387_v55, %v531_v62  ;;  %v709_v51 = vadd.f32 %v2383_v52, %v2418_v59 }
  0xce   :  { %v678_v2 = vadd.f32 %v2368_v34, %v342_v63  ;;  %v2422_v3 = vpop.f32.mrf.mxu0  ;;  %v968_v6 = vmul.f32 %v1957_v61, %v2375_v37  ;;  %v1959_v10 = vpop.eup %1958 }
  0xcf   :  { %389 = vmatmul.f32.gmra.mxu1 %v125_v0  ;;  %v1961_v14 = vpop.eup %1960  ;;  %v936_v16 = vmul.f32 %v1959_v10, %v2375_v37  ;;  %v647_v58 = vadd.f32 %v2361_v24, %v2422_v3 }
  0xd0   :  { %296 = vmatmul.f32.gmra.mxu0 %v94_v1  ;;  %1962 = vtanh.f32 %v678_v2  ;;  %v1228_v13 = vsel %vm49_vm0, %v968_v6, 0.0  ;;  %v937_v25 = vmul.f32 %v1961_v14, %v2375_v37 }
  0xd1   :  { %485 = vmatmul.f32.gmra.mxu2 %v157_v4  ;;  %1037 = vadd.xlane.f32.xlu1 %v1036_v9  ;;  %1964 = vtanh.f32 %v645_v7  ;;  %v1132_v30 = vsel %vm49_vm0, %v936_v16, 0.0  ;;  %v128_v4 = vld [vmem:[#allocation2 + $0x1b8] sm:$0xff] }
  0xd2   :  { %581 = vmatmul.f32.gmra.mxu3 %v189_v8  ;;  %1322 = vadd.xlane.f32.xlu2 %v1321_v12  ;;  %1966 = vtanh.f32 %v646_v11  ;;  %v1135_v38 = vsel %vm49_vm0, %v937_v25, 0.0  ;;  %v160_v8 = vld [vmem:[#allocation2 + $0x2b8] sm:$0xff] }
  0xd3   :  { %1229 = vadd.xlane.f32.xlu0 %v1228_v13  ;;  %v192_v11 = vld [vmem:[#allocation2 + $0x3b8] sm:$0xff] }
  0xd4   :  { %v2432_v15 = vpop.f32.mrf.mxu2  ;;  %v2435_v17 = vpop.f32.mrf.mxu3 }
  0xd5   :  { %v2437_v18 = vpop.f32.mrf.mxu1  ;;  %v710_v16 = vadd.f32 %v2383_v52, %v2432_v15  ;;  %v129_v15 = vld [vmem:[#allocation2 + $0x1c0] sm:$0xff] }
  0xd6   :  { %v252_v21 = vpop.f32.mrf.mxu0  ;;  %v1963_v26 = vpop.eup %1962  ;;  %v679_v10 = vadd.f32 %v2368_v34, %v2437_v18 }
  0xd7   :  { %v648_v28 = vadd.f32 %v2361_v24, %v252_v21  ;;  %392 = vmatmul.f32.gmra.mxu1 %v126_v19  ;;  %v938_v31 = vmul.f32 %v1963_v26, %v2375_v37  ;;  %v1965_v32 = vpop.eup %1964 }
  0xd8   :  { %299 = vmatmul.f32.gmra.mxu0 %v95_v20  ;;  %v1967_v40 = vpop.eup %1966  ;;  %v905_v42 = vmul.f32 %v1965_v32, %v2375_v37 }
  0xd9   :  { %488 = vmatmul.f32.gmra.mxu2 %v158_v23  ;;  %1133 = vadd.xlane.f32.xlu1 %v1132_v30  ;;  %1968 = vtanh.f32 %v648_v28  ;;  %v1138_v39 = vsel %vm49_vm0, %v938_v31, 0.0  ;;  %v906_v50 = vmul.f32 %v1967_v40, %v2375_v37 }
  0xda   :  { %584 = vmatmul.f32.gmra.mxu3 %v190_v29  ;;  %1970 = vtanh.f32 %v740_v27  ;;  %1136 = vadd.xlane.f32.xlu2 %v1135_v38  ;;  %v1039_v56 = vsel %vm49_vm0, %v905_v42, 0.0  ;;  %v98_v27 = vld [vmem:[#allocation2 + $0xc8] sm:$0xff]  ;;  %v161_v29 = vld [vmem:[#allocation2 + $0x2c0] sm:$0xff]  ;;  %v742_v42 = vadd.f32 %v2387_v55, %v2435_v17 }
  0xdb   :  { %1139 = vadd.xlane.f32.xlu0 %v1138_v39  ;;  %1972 = vtanh.f32 %v741_v36  ;;  %v1042_v61 = vsel %vm49_vm0, %v906_v50, 0.0  ;;  %v193_v38 = vld [vmem:[#allocation2 + $0x3c0] sm:$0xff]  ;;  %v130_v17 = vld [vmem:[#allocation2 + $0x1c8] sm:$0xff] }
  0xdc   :  { %v441_v41 = vpop.f32.mrf.mxu2  ;;  %v2450_v44 = vpop.f32.mrf.mxu3 }
  0xdd   :  { %v711_v43 = vadd.f32 %v2383_v52, %v441_v41  ;;  %v2452_v45 = vpop.f32.mrf.mxu1 }
  0xde   :  { %v2454_v48 = vpop.f32.mrf.mxu0 }
  0xdf   :  { %1974 = vtanh.f32 %v711_v43  ;;  %v1969_v54 = vpop.eup %1968  ;;  %395 = vmatmul.f32.gmra.mxu1 %v127_v46  ;;  %v649_v32 = vadd.f32 %v2361_v24, %v2454_v48 }
  0xe0   :  { %302 = vmatmul.f32.gmra.mxu0 %v96_v47  ;;  %v1971_v57 = vpop.eup %1970  ;;  %v908_v60 = vmul.f32 %v1969_v54, %v2375_v37  ;;  %1976 = vtanh.f32 %v709_v51 }
  0xe1   :  { %491 = vmatmul.f32.gmra.mxu2 %v159_v49  ;;  %1040 = vadd.xlane.f32.xlu1 %v1039_v56  ;;  %v1973_v62 = vpop.eup %1972  ;;  %v1000_v0 = vmul.f32 %v1971_v57, %v2375_v37  ;;  %1978 = vtanh.f32 %v647_v58  ;;  %v162_v56 = vld [vmem:[#allocation2 + $0x2c8] sm:$0xff] }
  0xe2   :  { %587 = vmatmul.f32.gmra.mxu3 %v191_v53  ;;  %1043 = vadd.xlane.f32.xlu2 %v1042_v61  ;;  %v1048_v59 = vsel %vm49_vm0, %v908_v60, 0.0  ;;  %v1001_v9 = vmul.f32 %v1973_v62, %v2375_v37  ;;  %v99_v53 = vld [vmem:[#allocation2 + $0xd0] sm:$0xff]  ;;  %v194_v61 = vld [vmem:[#allocation2 + $0x3c8] sm:$0xff] }
  0xe3   :  { %1049 = vadd.xlane.f32.xlu0 %v1048_v59  ;;  %v1324_v13 = vsel %vm49_vm0, %v1000_v0, 0.0 }
  0xe4   :  { %v2465_v63 = vpop.f32.mrf.mxu2  ;;  %v2468_v2 = vpop.f32.mrf.mxu3  ;;  %v1327_v19 = vsel %vm49_vm0, %v1001_v9, 0.0 }
  0xe5   :  { %v1975_v1 = vpop.eup %1974  ;;  %v351_v3 = vpop.f32.mrf.mxu1  ;;  %v712_v58 = vadd.f32 %v2383_v52, %v2465_v63 }
  0xe6   :  { %v681_v6 = vadd.f32 %v2368_v34, %v351_v3  ;;  %v2471_v7 = vpop.f32.mrf.mxu0  ;;  %v971_v12 = vmul.f32 %v1975_v1, %v2375_v37  ;;  %v1977_v14 = vpop.eup %1976  ;;  %v680_v1 = vadd.f32 %v2368_v34, %v2452_v45 }
  0xe7   :  { %398 = vmatmul.f32.gmra.mxu1 %v128_v4  ;;  %v1979_v20 = vpop.eup %1978  ;;  %v969_v23 = vmul.f32 %v1977_v14, %v2375_v37 }
  0xe8   :  { %305 = vmatmul.f32.gmra.mxu0 %v97_v5  ;;  %1980 = vtanh.f32 %v681_v6  ;;  %v1237_v18 = vsel %vm49_vm0, %v971_v12, 0.0  ;;  %v907_v30 = vmul.f32 %v1979_v20, %v2375_v37  ;;  %v163_v12 = vld [vmem:[#allocation2 + $0x2d0] sm:$0xff] }
  0xe9   :  { %494 = vmatmul.f32.gmra.mxu2 %v160_v8  ;;  %1325 = vadd.xlane.f32.xlu1 %v1324_v13  ;;  %1982 = vtanh.f32 %v679_v10  ;;  %v1231_v39 = vsel %vm49_vm0, %v969_v23, 0.0  ;;  %v131_v10 = vld [vmem:[#allocation2 + $0x1d0] sm:$0xff] }
  0xea   :  { %590 = vmatmul.f32.gmra.mxu3 %v192_v11  ;;  %1328 = vadd.xlane.f32.xlu2 %v1327_v19  ;;  %1984 = vtanh.f32 %v710_v16  ;;  %v1045_v46 = vsel %vm49_vm0, %v907_v30, 0.0  ;;  %v100_v11 = vld [vmem:[#allocation2 + $0xd8] sm:$0xff]  ;;  %v195_v19 = vld [vmem:[#allocation2 + $0x3d0] sm:$0xff] }
  0xeb   :  { %1238 = vadd.xlane.f32.xlu0 %v1237_v18 }
  0xec   :  { %v2482_v21 = vpop.f32.mrf.mxu2  ;;  %v543_v25 = vpop.f32.mrf.mxu3 }
  0xed   :  { %v2485_v26 = vpop.f32.mrf.mxu1  ;;  %v745_v28 = vadd.f32 %v2387_v55, %v543_v25  ;;  %v743_v25 = vadd.f32 %v2387_v55, %v2450_v44 }
  0xee   :  { %v1981_v31 = vpop.eup %1980  ;;  %v261_v36 = vpop.f32.mrf.mxu0  ;;  %v682_v14 = vadd.f32 %v2368_v34, %v2485_v26 }
  0xef   :  { %1986 = vtanh.f32 %v745_v28  ;;  %401 = vmatmul.f32.gmra.mxu1 %v129_v15  ;;  %v941_v40 = vmul.f32 %v1981_v31, %v2375_v37  ;;  %v1983_v41 = vpop.eup %1982  ;;  %v651_v43 = vadd.f32 %v2361_v24, %v261_v36  ;;  %v101_v36 = vld [vmem:[#allocation2 + $0xe0] sm:$0xff] }
  0xf0   :  { %308 = vmatmul.f32.gmra.mxu0 %v98_v27  ;;  %v1985_v48 = vpop.eup %1984  ;;  %1988 = vtanh.f32 %v649_v32  ;;  %v939_v49 = vmul.f32 %v1983_v41, %v2375_v37  ;;  %v132_v32 = vld [vmem:[#allocation2 + $0x1d8] sm:$0xff] }
  0xf1   :  { %497 = vmatmul.f32.gmra.mxu2 %v161_v29  ;;  %1232 = vadd.xlane.f32.xlu1 %v1231_v39  ;;  %v1147_v47 = vsel %vm49_vm0, %v941_v40, 0.0  ;;  %1990 = vtanh.f32 %v742_v42  ;;  %v970_v57 = vmul.f32 %v1985_v48, %v2375_v37  ;;  %v196_v42 = vld [vmem:[#allocation2 + $0x3d8] sm:$0xff]  ;;  %v744_v48 = vadd.f32 %v2387_v55, %v2468_v2 }
  0xf2   :  { %593 = vmatmul.f32.gmra.mxu3 %v193_v38  ;;  %1046 = vadd.xlane.f32.xlu2 %v1045_v46  ;;  %1992 = vtanh.f32 %v651_v43  ;;  %v1141_v59 = vsel %vm49_vm0, %v939_v49, 0.0  ;;  %v164_v38 = vld [vmem:[#allocation2 + $0x2d8] sm:$0xff] }
  0xf3   :  { %1148 = vadd.xlane.f32.xlu0 %v1147_v47  ;;  %v1234_v4 = vsel %vm49_vm0, %v970_v57, 0.0  ;;  %1994 = vtanh.f32 %v712_v58  ;;  %v133_v58 = vld [vmem:[#allocation2 + $0x1e0] sm:$0xff] }
  0xf4   :  { %v2499_v50 = vpop.f32.mrf.mxu3  ;;  %v450_v60 = vpop.f32.mrf.mxu2  ;;  %1996 = vtanh.f32 %v680_v1  ;;  %v197_v1 = vld [vmem:[#allocation2 + $0x3e0] sm:$0xff] }
  0xf5   :  { %v2501_v51 = vpop.f32.mrf.mxu1  ;;  %v1987_v54 = vpop.eup %1986  ;;  %v714_v3 = vadd.f32 %v2383_v52, %v450_v60  ;;  %v746_v40 = vadd.f32 %v2387_v55, %v2499_v50  ;;  %v102_v60 = vld [vmem:[#allocation2 + $0xe8] sm:$0xff] }
  0xf6   :  { %v1005_v62 = vmul.f32 %v1987_v54, %v2375_v37  ;;  %v1989_v0 = vpop.eup %1988  ;;  %v2512_v5 = vpop.f32.mrf.mxu0 }
  0xf7   :  { %404 = vmatmul.f32.gmra.mxu1 %v130_v17  ;;  %v1991_v63 = vpop.eup %1990  ;;  %v909_v9 = vmul.f32 %v1989_v0, %v2375_v37  ;;  %1998 = vtanh.f32 %v714_v3 }
  0xf8   :  { %311 = vmatmul.f32.gmra.mxu0 %v99_v53  ;;  %v1339_v6 = vsel %vm49_vm0, %v1005_v62, 0.0  ;;  %v1993_v8 = vpop.eup %1992  ;;  %v1002_v13 = vmul.f32 %v1991_v63, %v2375_v37  ;;  %2000 = vtanh.f32 %v682_v14  ;;  %v134_v14 = vld [vmem:[#allocation2 + $0x1e8] sm:$0xff] }
  0xf9   :  { %500 = vmatmul.f32.gmra.mxu2 %v162_v56  ;;  %1142 = vadd.xlane.f32.xlu1 %v1141_v59  ;;  %v911_v20 = vmul.f32 %v1993_v8, %v2375_v37  ;;  %v1051_v18 = vsel %vm49_vm0, %v909_v9, 0.0  ;;  %v1995_v23 = vpop.eup %1994  ;;  %2002 = vtanh.f32 %v743_v25  ;;  %v652_v59 = vadd.f32 %v2361_v24, %v2512_v5  ;;  %v198_v25 = vld [vmem:[#allocation2 + $0x3e8] sm:$0xff] }
  0xfa   :  { %596 = vmatmul.f32.gmra.mxu3 %v194_v61  ;;  %1235 = vadd.xlane.f32.xlu2 %v1234_v4  ;;  %v1330_v27 = vsel %vm49_vm0, %v1002_v13, 0.0  ;;  %v1997_v26 = vpop.eup %1996  ;;  %v972_v31 = vmul.f32 %v1995_v23, %v2375_v37  ;;  %v165_v61 = vld [vmem:[#allocation2 + $0x2e0] sm:$0xff] }
  0xfb   :  { %1340 = vadd.xlane.f32.xlu0 %v1339_v6  ;;  %v1057_v29 = vsel %vm49_vm0, %v911_v20, 0.0  ;;  %v940_v39 = vmul.f32 %v1997_v26, %v2375_v37  ;;  %v650_v6 = vadd.f32 %v2361_v24, %v2471_v7 }
  0xfc   :  { %v2516_v45 = vpop.f32.mrf.mxu3  ;;  %v2527_v28 = vpop.f32.mrf.mxu2  ;;  %v1240_v46 = vsel %vm49_vm0, %v972_v31, 0.0 }
  0xfd   :  { %v360_v16 = vpop.f32.mrf.mxu1  ;;  %v1999_v30 = vpop.eup %1998  ;;  %v1144_v17 = vsel %vm49_vm0, %v940_v39, 0.0 }
  0xfe   :  { %v684_v15 = vadd.f32 %v2368_v34, %v360_v16  ;;  %v2531_v44 = vpop.f32.mrf.mxu0  ;;  %v974_v43 = vmul.f32 %v1999_v30, %v2375_v37  ;;  %v2001_v47 = vpop.eup %2000  ;;  %v103_v16 = vld [vmem:[#allocation2 + $0xf0] sm:$0xff] }
  0xff   :  { %407 = vmatmul.f32.gmra.mxu1 %v131_v10  ;;  %v2003_v50 = vpop.eup %2002  ;;  %v942_v57 = vmul.f32 %v2001_v47, %v2375_v37 }
 0x100   :  { %314 = vmatmul.f32.gmra.mxu0 %v100_v11  ;;  %2004 = vtanh.f32 %v684_v15  ;;  %v1246_v54 = vsel %vm49_vm0, %v974_v43, 0.0  ;;  %v1003_v62 = vmul.f32 %v2003_v50, %v2375_v37 }
 0x101   :  { %503 = vmatmul.f32.gmra.mxu2 %v163_v12  ;;  %1052 = vadd.xlane.f32.xlu1 %v1051_v18  ;;  %2006 = vtanh.f32 %v746_v40  ;;  %v1150_v4 = vsel %vm49_vm0, %v942_v57, 0.0  ;;  %v715_v18 = vadd.f32 %v2383_v52, %v2527_v28  ;;  %v135_v40 = vld [vmem:[#allocation2 + $0x1f0] sm:$0xff] }
 0x102   :  { %599 = vmatmul.f32.gmra.mxu3 %v195_v19  ;;  %1331 = vadd.xlane.f32.xlu2 %v1330_v27  ;;  %2008 = vtanh.f32 %v744_v48  ;;  %v1333_v9 = vsel %vm49_vm0, %v1003_v62, 0.0  ;;  %v166_v19 = vld [vmem:[#allocation2 + $0x2e8] sm:$0xff]  ;;  %v199_v48 = vld [vmem:[#allocation2 + $0x3f0] sm:$0xff] }
 0x103   :  { %1058 = vadd.xlane.f32.xlu0 %v1057_v29  ;;  %v713_v29 = vadd.f32 %v2383_v52, %v2482_v21 }
 0x104   :  { %v552_v41 = vpop.f32.mrf.mxu3  ;;  %v2546_v2 = vpop.f32.mrf.mxu2 }
 0x105   :  { %v748_v49 = vadd.f32 %v2387_v55, %v552_v41  ;;  %v2542_v53 = vpop.f32.mrf.mxu1  ;;  %v104_v41 = vld [vmem:[#allocation2 + $0xf8] sm:$0xff] }
 0x106   :  { %v2005_v56 = vpop.eup %2004  ;;  %v270_v0 = vpop.f32.mrf.mxu0 }
 0x107   :  { %410 = vmatmul.f32.gmra.mxu1 %v132_v32  ;;  %2010 = vtanh.f32 %v748_v49  ;;  %v944_v3 = vmul.f32 %v2005_v56, %v2375_v37  ;;  %v2007_v63 = vpop.eup %2006  ;;  %v654_v8 = vadd.f32 %v2361_v24, %v270_v0 }
 0x108   :  { %317 = vmatmul.f32.gmra.mxu0 %v101_v36  ;;  %v2009_v5 = vpop.eup %2008  ;;  %2012 = vtanh.f32 %v652_v59  ;;  %v1006_v13 = vmul.f32 %v2007_v63, %v2375_v37 }
 0x109   :  { %506 = vmatmul.f32.gmra.mxu2 %v164_v38  ;;  %1241 = vadd.xlane.f32.xlu1 %v1240_v46  ;;  %v1156_v11 = vsel %vm49_vm0, %v944_v3, 0.0  ;;  %2014 = vtanh.f32 %v650_v6  ;;  %v1004_v20 = vmul.f32 %v2009_v5, %v2375_v37  ;;  %v685_v46 = vadd.f32 %v2368_v34, %v2542_v53 }
 0x10a   :  { %602 = vmatmul.f32.gmra.mxu3 %v196_v42  ;;  %1145 = vadd.xlane.f32.xlu2 %v1144_v17  ;;  %2016 = vtanh.f32 %v654_v8  ;;  %v1342_v27 = vsel %vm49_vm0, %v1006_v13, 0.0  ;;  %v167_v42 = vld [vmem:[#allocation2 + $0x2f0] sm:$0xff] }
 0x10b   :  { %1247 = vadd.xlane.f32.xlu0 %v1246_v54  ;;  %v1336_v31 = vsel %vm49_vm0, %v1004_v20, 0.0  ;;  %2018 = vtanh.f32 %v715_v18  ;;  %v683_v54 = vadd.f32 %v2368_v34, %v2501_v51 }
 0x10c   :  { %v2557_v10 = vpop.f32.mrf.mxu3  ;;  %v459_v23 = vpop.f32.mrf.mxu2  ;;  %2020 = vtanh.f32 %v713_v29 }
 0x10d   :  { %v2011_v12 = vpop.eup %2010  ;;  %v2561_v7 = vpop.f32.mrf.mxu1  ;;  %v717_v30 = vadd.f32 %v2383_v52, %v459_v23 }
 0x10e   :  { %v1008_v15 = vmul.f32 %v2011_v12, %v2375_v37  ;;  %v2013_v26 = vpop.eup %2012  ;;  %v2572_v32 = vpop.f32.mrf.mxu0 }
 0x10f   :  { %413 = vmatmul.f32.gmra.mxu1 %v133_v58  ;;  %v2015_v28 = vpop.eup %2014  ;;  %v912_v39 = vmul.f32 %v2013_v26, %v2375_v37  ;;  %2022 = vtanh.f32 %v717_v30  ;;  %v655_v23 = vadd.f32 %v2361_v24, %v2572_v32  ;;  %v653_v30 = vadd.f32 %v2361_v24, %v2531_v44 }
 0x110   :  { %320 = vmatmul.f32.gmra.mxu0 %v102_v60  ;;  %v1348_v36 = vsel %vm49_vm0, %v1008_v15, 0.0  ;;  %v2017_v38 = vpop.eup %2016  ;;  %v910_v43 = vmul.f32 %v2015_v28, %v2375_v37  ;;  %2024 = vtanh.f32 %v685_v46 }
 0x111   :  { %509 = vmatmul.f32.gmra.mxu2 %v165_v61  ;;  %1151 = vadd.xlane.f32.xlu1 %v1150_v4  ;;  %v914_v49 = vmul.f32 %v2017_v38, %v2375_v37  ;;  %v1060_v17 = vsel %vm49_vm0, %v912_v39, 0.0  ;;  %v2019_v50 = vpop.eup %2018  ;;  %2026 = vtanh.f32 %v683_v54  ;;  %v200_v4 = vld [vmem:[#allocation2 + $0x3f8] sm:$0xff] }
 0x112   :  { %605 = vmatmul.f32.gmra.mxu3 %v197_v1  ;;  %1334 = vadd.xlane.f32.xlu2 %v1333_v9  ;;  %v1054_v53 = vsel %vm49_vm0, %v910_v43, 0.0  ;;  %v2021_v58 = vpop.eup %2020  ;;  %v975_v62 = vmul.f32 %v2019_v50, %v2375_v37  ;;  %v749_v1 = vadd.f32 %v2387_v55, %v2557_v10  ;;  %v747_v9 = vadd.f32 %v2387_v55, %v2516_v45 }
 0x113   :  { %1157 = vadd.xlane.f32.xlu0 %v1156_v11  ;;  %v1066_v60 = vsel %vm49_vm0, %v914_v49, 0.0  ;;  %v973_v0 = vmul.f32 %v2021_v58, %v2375_v37  ;;  %v1414_v45 = vlaneseq  ;;  %v716_v58 = vadd.f32 %v2383_v52, %v2546_v2  ;;  %v2649_v2 = vld [vmem:[%s3371_s5] ss:$0 sm:$0xff] }
 0x114   :  { %v2576_v21 = vpop.f32.mrf.mxu3  ;;  %v2585_v56 = vpop.f32.mrf.mxu2  ;;  %v1249_v6 = vsel %vm49_vm0, %v975_v62, 0.0 }
 0x115   :  { %v369_v47 = vpop.f32.mrf.mxu1  ;;  %v2023_v61 = vpop.eup %2022  ;;  %v1243_v11 = vsel %vm49_vm0, %v973_v0, 0.0  ;;  %v2620_v28 = vand.u32 127, %v1414_v45 }
 0x116   :  { %v687_v57 = vadd.f32 %v2368_v34, %v369_v47  ;;  %v2591_v51 = vpop.f32.mrf.mxu0  ;;  %v977_v63 = vmul.f32 %v2023_v61, %v2375_v37  ;;  %v2025_v8 = vpop.eup %2024  ;;  %v718_v47 = vadd.f32 %v2383_v52, %v2585_v56 }
 0x117   :  { %416 = vmatmul.f32.gmra.mxu1 %v134_v14  ;;  %v2027_v12 = vpop.eup %2026 }
 0x118   :  { %323 = vmatmul.f32.gmra.mxu0 %v103_v16  ;;  %2028 = vtanh.f32 %v687_v57  ;;  %v1255_v10 = vsel %vm49_vm0, %v977_v63, 0.0  ;;  %v945_v16 = vmul.f32 %v2025_v8, %v2375_v37  ;;  %v943_v18 = vmul.f32 %v2027_v12, %v2375_v37 }
 0x119   :  { %512 = vmatmul.f32.gmra.mxu2 %v166_v19  ;;  %1343 = vadd.xlane.f32.xlu1 %v1342_v27  ;;  %2030 = vtanh.f32 %v749_v1 }
 0x11a   :  { %608 = vmatmul.f32.gmra.mxu3 %v198_v25  ;;  %1337 = vadd.xlane.f32.xlu2 %v1336_v31  ;;  %2032 = vtanh.f32 %v747_v9  ;;  %v1159_v26 = vsel %vm49_vm0, %v945_v16, 0.0 }
 0x11b   :  { %1349 = vadd.xlane.f32.xlu0 %v1348_v36  ;;  %v1153_v36 = vsel %vm49_vm0, %v943_v18, 0.0 }
 0x11c   :  { %v561_v3 = vpop.f32.mrf.mxu3  ;;  %v2605_v14 = vpop.f32.mrf.mxu2 }
 0x11d   :  { %v751_v5 = vadd.f32 %v2387_v55, %v561_v3  ;;  %v372_v19 = vpop.f32.mrf.mxu1 }
 0x11e   :  { %v2029_v13 = vpop.eup %2028  ;;  %v279_v25 = vpop.f32.mrf.mxu0  ;;  %v688_v8 = vadd.f32 %v2368_v34, %v372_v19  ;;  %v686_v19 = vadd.f32 %v2368_v34, %v2561_v7 }
 0x11f   :  { %419 = vmatmul.f32.gmra.mxu1 %v135_v40  ;;  %2034 = vtanh.f32 %v751_v5  ;;  %v947_v27 = vmul.f32 %v2029_v13, %v2375_v37  ;;  %v2031_v29 = vpop.eup %2030  ;;  %v657_v31 = vadd.f32 %v2361_v24, %v279_v25 }
 0x120   :  { %326 = vmatmul.f32.gmra.mxu0 %v104_v41  ;;  %v2033_v38 = vpop.eup %2032  ;;  %2036 = vtanh.f32 %v655_v23  ;;  %v2625_v41 = vadd.s32 4294967288, %v2620_v28  ;;  %v1009_v44 = vmul.f32 %v2031_v29, %v2375_v37 }
 0x121   :  { %515 = vmatmul.f32.gmra.mxu2 %v167_v42  ;;  %1061 = vadd.xlane.f32.xlu1 %v1060_v17  ;;  %v1165_v32 = vsel %vm49_vm0, %v947_v27, 0.0  ;;  %2038 = vtanh.f32 %v653_v30  ;;  %v1007_v46 = vmul.f32 %v2033_v38, %v2375_v37  ;;  %v2666_v27 = vadd.s32 4294967280, %v2620_v28 }
 0x122   :  { %611 = vmatmul.f32.gmra.mxu3 %v199_v48  ;;  %1055 = vadd.xlane.f32.xlu2 %v1054_v53  ;;  %2040 = vtanh.f32 %v657_v31  ;;  %v1351_v57 = vsel %vm49_vm0, %v1009_v44, 0.0 }
 0x123   :  { %1067 = vadd.xlane.f32.xlu0 %v1066_v60  ;;  %v1345_v62 = vsel %vm49_vm0, %v1007_v46, 0.0  ;;  %2042 = vtanh.f32 %v718_v47 }
 0x124   :  { %v468_v42 = vpop.f32.mrf.mxu2  ;;  %v564_v60 = vpop.f32.mrf.mxu3  ;;  %2044 = vtanh.f32 %v716_v58 }
 0x125   :  { %v2593_v59 = vpop.xlane.xlu0 %1031  ;;  %v2035_v39 = vpop.eup %2034  ;;  %v720_v56 = vadd.f32 %v2383_v52, %v468_v42 }
 0x126   :  { %v2633_v48 = vpop.f32.mrf.mxu1  ;;  %v1011_v17 = vmul.f32 %v2035_v39, %v2375_v37  ;;  %v1545_v50 = vperm.slane %v2593_v59, %v2620_v28  ;;  %v2037_v53 = vpop.eup %2036 }
 0x127   :  { %v2039_v37 = vpop.eup %2038  ;;  %v282_v0 = vpop.f32.mrf.mxu0  ;;  %2046 = vtanh.f32 %v720_v56 }
 0x128   :  { %v1357_v59 = vsel %vm49_vm0, %v1011_v17, 0.0  ;;  %v2041_v1 = vpop.eup %2040  ;;  %2048 = vtanh.f32 %v688_v8 }
 0x129   :  { %1250 = vadd.xlane.f32.xlu1 %v1249_v6  ;;  %v913_v6 = vmul.f32 %v2649_v2, %v2039_v37  ;;  %v917_v12 = vmul.f32 %v2649_v2, %v2041_v1  ;;  %v2043_v18 = vpop.eup %2042  ;;  %2050 = vtanh.f32 %v686_v19 }
 0x12a   :  { %614 = vmatmul.f32.gmra.mxu3 %v200_v4  ;;  %1244 = vadd.xlane.f32.xlu2 %v1243_v11  ;;  %v915_v4 = vmul.f32 %v2649_v2, %v2037_v53  ;;  %v2045_v31 = vpop.eup %2044 }
 0x12b   :  { %1256 = vadd.xlane.f32.xlu0 %v1255_v10  ;;  %v619_v10 = vrot.slane %v2357_v22, 1  ;;  %v1063_v30 = vsel %vm49_vm0, %v913_v6, 0.0  ;;  %v1075_v7 = vsel %vm49_vm0, %v917_v12, 0.0 }
 0x12c   :  { %v1069_v45 = vsel %vm49_vm0, %v915_v4, 0.0  ;;  %v471_v29 = vpop.f32.mrf.mxu2 }
 0x12d   :  { %v2608_v20 = vpop.xlane.xlu2 %1127  ;;  %v2613_v15 = vpop.xlane.xlu0 %1220 }
 0x12e   :  { %v1637_v13 = vperm.slane %v2608_v20, %v2620_v28  ;;  %v378_v23 = vpop.f32.mrf.mxu1  ;;  %v2047_v38 = vpop.eup %2046 }
 0x12f   :  { %v2677_v44 = vpop.f32.mrf.mxu0  ;;  %v980_v53 = vmul.f32 %v2649_v2, %v2047_v38  ;;  %v2049_v56 = vpop.eup %2048 }
 0x130   :  { %v2051_v1 = vpop.eup %2050 }
 0x131   :  { %1160 = vadd.xlane.f32.xlu1 %v1159_v26  ;;  %v752_v26 = vadd.f32 %v2387_v55, %v564_v60  ;;  %v1264_v4 = vsel %vm49_vm0, %v980_v53, 0.0 }
 0x132   :  { %1154 = vadd.xlane.f32.xlu2 %v1153_v36  ;;  %v2671_v36 = vpop.f32.mrf.mxu3 }
 0x133   :  { %1166 = vadd.xlane.f32.xlu0 %v1165_v32  ;;  %v2674_v32 = vperm.slane %v619_v10, 0  ;;  %2052 = vtanh.f32 %v752_v26  ;;  %v721_v10 = vadd.f32 %v2383_v52, %v471_v29  ;;  %v656_v29 = vadd.f32 %v2361_v24, %v2591_v51 }
 0x134   :  { %v1224_v40 = vpop.xlane.xlu1 %1223  ;;  %v2704_v6 = vpop.f32.mrf.mxu2 }
 0x135   :  { %v2628_v43 = vpop.xlane.xlu2 %1316  ;;  %v1699_v9 = vperm.slane %v1224_v40, %v2620_v28  ;;  %v978_v40 = vmul.f32 %v2649_v2, %v2043_v18  ;;  %v658_v46 = vadd.f32 %v2674_v32, %v282_v0 }
 0x136   :  { %v1035_v49 = vpop.xlane.xlu0 %1034 }
 0x137   :  { %v1547_v54 = vperm.slane %v1035_v49, %v2625_v41  ;;  %v976_v49 = vmul.f32 %v2649_v2, %v2045_v31  ;;  %v1258_v60 = vsel %vm49_vm0, %v978_v40, 0.0  ;;  %2054 = vtanh.f32 %v658_v46 }
 0x139   :  { %1352 = vadd.xlane.f32.xlu1 %v1351_v57  ;;  %v1549_v61 = vsel %vm1548_vm1, %v1547_v54, %v1545_v50 }
 0x13a   :  { %1346 = vadd.xlane.f32.xlu2 %v1345_v62  ;;  %v750_v62 = vadd.f32 %v2387_v55, %v2576_v21  ;;  %v2053_v21 = vpop.eup %2052 }
 0x13b   :  { %1358 = vadd.xlane.f32.xlu0 %v1357_v59  ;;  %v1252_v59 = vsel %vm49_vm0, %v976_v49, 0.0 }
 0x13c   :  { %v1320_v3 = vpop.xlane.xlu1 %1319  ;;  %2056 = vtanh.f32 %v750_v62 }
 0x13d   :  { %v1227_v63 = vpop.xlane.xlu2 %1226  ;;  %v1761_v17 = vperm.slane %v1320_v3, %v2620_v28  ;;  %v381_v3 = vpop.f32.mrf.mxu1 }
 0x13e   :  { %v1700_v5 = vperm.slane %v1227_v63, %v2625_v41  ;;  %v1131_v11 = vpop.xlane.xlu0 %1130  ;;  %v2702_v63 = vadd.s32 4294967272, %v2620_v28  ;;  %v2055_v31 = vpop.eup %2054 }
 0x13f   :  { %v1638_v16 = vperm.slane %v1131_v11, %v2625_v41  ;;  %v2710_v11 = vpop.f32.mrf.mxu3  ;;  %v918_v51 = vmul.f32 %v2649_v2, %v2055_v31 }
 0x140   :  { %v1701_v25 = vsel %vm1548_vm1, %v1700_v5, %v1699_v9  ;;  %v2707_v9 = vadd.s32 4294967264, %v2620_v28  ;;  %v948_v5 = vmul.f32 %v2649_v2, %v2049_v56 }
 0x141   :  { %1070 = vadd.xlane.f32.xlu1 %v1069_v45  ;;  %v1639_v20 = vsel %vm1548_vm1, %v1638_v16, %v1637_v13  ;;  %v946_v16 = vmul.f32 %v2649_v2, %v2051_v1  ;;  %v288_v45 = vpop.f32.mrf.mxu0  ;;  %v1078_v1 = vsel %vm49_vm0, %v918_v51, 0.0 }
 0x142   :  { %1064 = vadd.xlane.f32.xlu2 %v1063_v30  ;;  %v1168_v30 = vsel %vm49_vm0, %v948_v5, 0.0  ;;  %v660_v38 = vadd.f32 %v2674_v32, %v288_v45  ;;  %v2057_v40 = vpop.eup %2056 }
 0x143   :  { %1076 = vadd.xlane.f32.xlu0 %v1075_v7  ;;  %v1010_v53 = vmul.f32 %v2649_v2, %v2057_v40 }
 0x144   :  { %v1038_v39 = vpop.xlane.xlu1 %1037 }
 0x145   :  { %v1551_v42 = vperm.slane %v1038_v39, %v2666_v27  ;;  %v1323_v47 = vpop.xlane.xlu2 %1322  ;;  %v1162_v39 = vsel %vm49_vm0, %v946_v16, 0.0  ;;  %v2731_v49 = vpop.f32.mrf.mxu1 }
 0x146   :  { %v1762_v54 = vperm.slane %v1323_v47, %v2625_v41  ;;  %v1230_v57 = vpop.xlane.xlu0 %1229  ;;  %v625_v47 = vrot.slane %v2357_v22, 7 }
 0x147   :  { %v2684_v50 = vsel %vm1552_vm2, %v1551_v42, %v1549_v61  ;;  %v1702_v58 = vperm.slane %v1230_v57, %v2666_v27  ;;  %v690_v61 = vadd.f32 %v2366_v33, %v378_v23 }
 0x148   :  { %v2693_v37 = vsel %vm1548_vm1, %v1762_v54, %v1761_v17  ;;  %v2734_v54 = vpop.f32.mrf.mxu2 }
 0x149   :  { %1259 = vadd.xlane.f32.xlu1 %v1258_v60  ;;  %v2697_v0 = vsel %vm1552_vm2, %v1702_v58, %v1701_v25  ;;  %2058 = vtanh.f32 %v690_v61  ;;  %v1012_v25 = vmul.f32 %v2649_v2, %v2053_v21  ;;  %v691_v58 = vadd.f32 %v2366_v33, %v381_v3  ;;  %v573_v60 = vpop.f32.mrf.mxu3 }
 0x14a   :  { %1253 = vadd.xlane.f32.xlu2 %v1252_v59  ;;  %2060 = vtanh.f32 %v721_v10  ;;  %v2744_v59 = vperm.slane %v625_v47, 0  ;;  %v719_v21 = vadd.f32 %v2383_v52, %v2605_v14  ;;  %v291_v14 = vpop.f32.mrf.mxu0 }
 0x14b   :  { %1265 = vadd.xlane.f32.xlu0 %v1264_v4  ;;  %v1360_v42 = vsel %vm49_vm0, %v1012_v25, 0.0  ;;  %2062 = vtanh.f32 %v656_v29 }
 0x14c   :  { %v1134_v8 = vpop.xlane.xlu1 %1133  ;;  %2064 = vtanh.f32 %v660_v38 }
 0x14d   :  { %v1640_v12 = vperm.slane %v1134_v8, %v2666_v27  ;;  %v1137_v13 = vpop.xlane.xlu2 %1136  ;;  %v755_v8 = vadd.f32 %v2744_v59, %v573_v60  ;;  %2066 = vtanh.f32 %v691_v58 }
 0x14e   :  { %v1642_v19 = vperm.slane %v1137_v13, %v2702_v63  ;;  %v1140_v23 = vpop.xlane.xlu0 %1139  ;;  %2068 = vtanh.f32 %v719_v21 }
 0x14f   :  { %v1641_v18 = vsel %vm1552_vm2, %v1640_v12, %v1639_v20  ;;  %v1644_v26 = vperm.slane %v1140_v23, %v2707_v9  ;;  %v2059_v46 = vpop.eup %2058  ;;  %2070 = vtanh.f32 %v755_v8  ;;  %v387_v23 = vpop.f32.mrf.mxu1 }
 0x150   :  { %v1643_v7 = vsel %vm1556_vm3, %v1642_v19, %v1641_v18  ;;  %v950_v61 = vmul.f32 %v2649_v2, %v2059_v46  ;;  %v2061_v4 = vpop.eup %2060  ;;  %v722_v19 = vadd.f32 %v2370_v35, %v2704_v6  ;;  %v480_v29 = vpop.f32.mrf.mxu2  ;;  %v693_v6 = vadd.f32 %v2366_v33, %v387_v23 }
 0x151   :  { %1169 = vadd.xlane.f32.xlu1 %v1168_v30  ;;  %v2725_v20 = vsel %vm1560_vm4, %v1644_v26, %v1643_v7  ;;  %v2063_v5 = vpop.eup %2062  ;;  %v981_v16 = vmul.f32 %v2649_v2, %v2061_v4  ;;  %v576_v23 = vpop.f32.mrf.mxu3 }
 0x152   :  { %1163 = vadd.xlane.f32.xlu2 %v1162_v39  ;;  %v1174_v12 = vsel %vm49_vm0, %v950_v61, 0.0  ;;  %v2065_v10 = vpop.eup %2064  ;;  %v916_v18 = vmul.f32 %v2649_v2, %v2063_v5  ;;  %v689_v39 = vadd.f32 %v2368_v34, %v2633_v48  ;;  %2072 = vtanh.f32 %v722_v19 }
 0x153   :  { %1361 = vadd.xlane.f32.xlu0 %v1360_v42  ;;  %v920_v31 = vmul.f32 %v2649_v2, %v2065_v10  ;;  %v1267_v7 = vsel %vm49_vm0, %v981_v16, 0.0  ;;  %v2067_v38 = vpop.eup %2066  ;;  %v2778_v48 = vadd.s32 4294967256, %v2620_v28  ;;  %v724_v5 = vadd.f32 %v2370_v35, %v480_v29 }
 0x154   :  { %v1041_v24 = vpop.xlane.xlu1 %1040  ;;  %v2069_v42 = vpop.eup %2068  ;;  %v951_v34 = vmul.f32 %v2649_v2, %v2067_v38  ;;  %2074 = vtanh.f32 %v689_v39 }
 0x155   :  { %v1555_v17 = vperm.slane %v1041_v24, %v2702_v63  ;;  %v1044_v57 = vpop.xlane.xlu2 %1043  ;;  %v1084_v46 = vsel %vm49_vm0, %v920_v31, 0.0  ;;  %v2071_v47 = vpop.eup %2070  ;;  %v2774_v24 = vadd.s32 4294967248, %v2620_v28  ;;  %2076 = vtanh.f32 %v693_v6 }
 0x156   :  { %v1559_v56 = vperm.slane %v1044_v57, %v2707_v9  ;;  %v2741_v62 = vpop.xlane.xlu0 %1049  ;;  %v661_v57 = vadd.f32 %v2674_v32, %v291_v14  ;;  %v979_v58 = vmul.f32 %v2649_v2, %v2069_v42  ;;  %v1015_v61 = vmul.f32 %v2649_v2, %v2071_v47 }
 0x157   :  { %v1557_v22 = vsel %vm1556_vm3, %v1555_v17, %v2684_v50  ;;  %v1354_v50 = vsel %vm49_vm0, %v1010_v53, 0.0  ;;  %v1567_v4 = vperm.slane %v2741_v62, %v2774_v24  ;;  %v1177_v21 = vsel %vm49_vm0, %v951_v34, 0.0  ;;  %v390_v14 = vpop.f32.mrf.mxu1 }
 0x158   :  { %v1561_v3 = vsel %vm1560_vm4, %v1559_v56, %v1557_v22  ;;  %v2073_v8 = vpop.eup %2072  ;;  %v1261_v10 = vsel %vm49_vm0, %v979_v58, 0.0  ;;  %2078 = vtanh.f32 %v661_v57  ;;  %v1369_v62 = vsel %vm49_vm0, %v1015_v61, 0.0 }
 0x159   :  { %1079 = vadd.xlane.f32.xlu1 %v1078_v1  ;;  %v2789_v1 = vpop.f32.mrf.mxu0 }
 0x15a   :  { %1355 = vadd.xlane.f32.xlu2 %v1354_v50  ;;  %v659_v50 = vadd.f32 %v2674_v32, %v2677_v44  ;;  %v2075_v16 = vpop.eup %2074  ;;  %v982_v44 = vmul.f32 %v2649_v2, %v2073_v8 }
 0x15b   :  { %1175 = vadd.xlane.f32.xlu0 %v1174_v12  ;;  %v483_v12 = vpop.f32.mrf.mxu2  ;;  %v949_v19 = vmul.f32 %v2649_v2, %v2075_v16 }
 0x15c   :  { %v1326_v13 = vpop.xlane.xlu1 %1325  ;;  %2080 = vtanh.f32 %v659_v50  ;;  %v1270_v39 = vsel %vm49_vm0, %v982_v44, 0.0 }
 0x15d   :  { %v1764_v52 = vperm.slane %v1326_v13, %v2666_v27  ;;  %v1329_v45 = vpop.xlane.xlu2 %1328  ;;  %2082 = vtanh.f32 %v724_v5  ;;  %v1171_v47 = vsel %vm49_vm0, %v949_v19, 0.0 }
 0x15e   :  { %v1766_v26 = vperm.slane %v1329_v45, %v2702_v63  ;;  %v2761_v30 = vpop.xlane.xlu0 %1238 }
 0x15f   :  { %v1765_v25 = vsel %vm1552_vm2, %v1764_v52, %v2693_v37  ;;  %v1072_v37 = vsel %vm49_vm0, %v916_v18, 0.0  ;;  %v2077_v52 = vpop.eup %2076  ;;  %v1708_v38 = vperm.slane %v2761_v30, %v2778_v48  ;;  %v2825_v30 = vadd.s32 4294967240, %v2620_v28  ;;  %v2839_v5 = vpop.f32.mrf.mxu1 }
 0x160   :  { %v2768_v40 = vsel %vm1556_vm3, %v1766_v26, %v1765_v25  ;;  %v694_v25 = vadd.f32 %v2366_v33, %v390_v14  ;;  %v2079_v6 = vpop.eup %2078 }
 0x161   :  { %1268 = vadd.xlane.f32.xlu1 %v1267_v7  ;;  %v953_v7 = vmul.f32 %v2649_v2, %v2077_v52  ;;  %v921_v58 = vmul.f32 %v2649_v2, %v2079_v6 }
 0x162   :  { %1073 = vadd.xlane.f32.xlu2 %v1072_v37  ;;  %v754_v37 = vadd.f32 %v2744_v59, %v2710_v11  ;;  %v2081_v34 = vpop.eup %2080  ;;  %2084 = vtanh.f32 %v694_v25 }
 0x163   :  { %1085 = vadd.xlane.f32.xlu0 %v1084_v46  ;;  %v2820_v46 = vpop.f32.mrf.mxu0  ;;  %v2083_v11 = vpop.eup %2082  ;;  %v919_v61 = vmul.f32 %v2649_v2, %v2081_v34 }
 0x164   :  { %v1233_v51 = vpop.xlane.xlu1 %1232  ;;  %v486_v57 = vpop.f32.mrf.mxu2  ;;  %2086 = vtanh.f32 %v754_v37 }
 0x165   :  { %v1704_v17 = vperm.slane %v1233_v51, %v2702_v63  ;;  %v1047_v53 = vpop.xlane.xlu2 %1046  ;;  %v1081_v14 = vsel %vm49_vm0, %v919_v61, 0.0 }
 0x166   :  { %v1563_v22 = vperm.slane %v1047_v53, %v2778_v48  ;;  %v2786_v56 = vpop.xlane.xlu0 %1148 }
 0x167   :  { %v1705_v60 = vsel %vm1556_vm3, %v1704_v17, %v2697_v0  ;;  %v1183_v17 = vsel %vm49_vm0, %v953_v7, 0.0  ;;  %v1650_v37 = vperm.slane %v2786_v56, %v2825_v30  ;;  %v2873_v56 = vadd.s32 4294967232, %v2620_v28 }
 0x168   :  { %v1565_v0 = vsel %vm1564_vm5, %v1563_v22, %v1561_v3  ;;  %v2085_v16 = vpop.eup %2084 }
 0x169   :  { %1178 = vadd.xlane.f32.xlu1 %v1177_v21  ;;  %v1569_v13 = vsel %vm1568_vm6, %v1567_v4, %v1565_v0  ;;  %v726_v4 = vadd.f32 %v2370_v35, %v486_v57  ;;  %v984_v0 = vmul.f32 %v2649_v2, %v2083_v11 }
 0x16a   :  { %1262 = vadd.xlane.f32.xlu2 %v1261_v10  ;;  %v1087_v10 = vsel %vm49_vm0, %v921_v58, 0.0 }
 0x16b   :  { %1370 = vadd.xlane.f32.xlu0 %v1369_v62  ;;  %v692_v62 = vadd.f32 %v2366_v33, %v2731_v49  ;;  %v1276_v44 = vsel %vm49_vm0, %v984_v0, 0.0 }
 0x16c   :  { %v1143_v45 = vpop.xlane.xlu1 %1142 }
 0x16d   :  { %v1646_v3 = vperm.slane %v1143_v45, %v2778_v48  ;;  %v1236_v18 = vpop.xlane.xlu2 %1235  ;;  %v2087_v45 = vpop.eup %2086 }
 0x16e   :  { %v1706_v31 = vperm.slane %v1236_v18, %v2707_v9  ;;  %v2810_v29 = vpop.xlane.xlu0 %1340  ;;  %v300_v18 = vpop.f32.mrf.mxu0 }
 0x16f   :  { %v2807_v26 = vsel %vm1564_vm5, %v1646_v3, %v2725_v20  ;;  %v756_v20 = vadd.f32 %v2744_v59, %v576_v23  ;;  %v954_v23 = vmul.f32 %v2649_v2, %v2085_v16 }
 0x170   :  { %v1707_v42 = vsel %vm1560_vm4, %v1706_v31, %v1705_v60  ;;  %v664_v31 = vadd.f32 %v2674_v32, %v300_v18  ;;  %v663_v18 = vadd.f32 %v2674_v32, %v2820_v46 }
 0x171   :  { %1271 = vadd.xlane.f32.xlu1 %v1270_v39  ;;  %v1709_v51 = vsel %vm1564_vm5, %v1708_v38, %v1707_v42  ;;  %2088 = vtanh.f32 %v756_v20  ;;  %v1186_v42 = vsel %vm49_vm0, %v954_v23, 0.0 }
 0x172   :  { %1172 = vadd.xlane.f32.xlu2 %v1171_v47  ;;  %2090 = vtanh.f32 %v726_v4  ;;  %v723_v47 = vadd.f32 %v2370_v35, %v2734_v54 }
 0x173   :  { %1184 = vadd.xlane.f32.xlu0 %v1183_v17  ;;  %2092 = vtanh.f32 %v692_v62  ;;  %v2868_v17 = vpop.f32.mrf.mxu1 }
 0x174   :  { %v1053_v53 = vpop.xlane.xlu1 %1052 }
 0x175   :  { %v1571_v60 = vperm.slane %v1053_v53, %v2825_v30  ;;  %v1332_v22 = vpop.xlane.xlu2 %1331 }
 0x176   :  { %v1768_v8 = vperm.slane %v1332_v22, %v2707_v9  ;;  %v2836_v50 = vpop.xlane.xlu0 %1058 }
 0x177   :  { %v2833_v21 = vsel %vm1572_vm7, %v1571_v60, %v1569_v13  ;;  %v725_v13 = vadd.f32 %v2370_v35, %v483_v12  ;;  %v2089_v3 = vpop.eup %2088  ;;  %v1014_v12 = vmul.f32 %v2649_v2, %v2087_v45  ;;  %v489_v60 = vpop.f32.mrf.mxu2 }
 0x178   :  { %v1769_v52 = vsel %vm1560_vm4, %v1768_v8, %v2768_v40  ;;  %v579_v40 = vpop.f32.mrf.mxu3  ;;  %v1016_v6 = vmul.f32 %v2649_v2, %v2089_v3  ;;  %v2091_v20 = vpop.eup %2090  ;;  %v727_v0 = vadd.f32 %v2370_v35, %v489_v60 }
 0x179   :  { %1088 = vadd.xlane.f32.xlu1 %v1087_v10  ;;  %2094 = vtanh.f32 %v725_v13  ;;  %v1366_v11 = vsel %vm49_vm0, %v1014_v12, 0.0  ;;  %v2093_v53 = vpop.eup %2092  ;;  %v986_v22 = vmul.f32 %v2649_v2, %v2091_v20  ;;  %v1774_v20 = vperm.slane %v2810_v29, %v2825_v30 }
 0x17a   :  { %1082 = vadd.xlane.f32.xlu2 %v1081_v14  ;;  %2096 = vtanh.f32 %v664_v31  ;;  %v1372_v54 = vsel %vm49_vm0, %v1016_v6, 0.0  ;;  %v952_v8 = vmul.f32 %v2649_v2, %v2093_v53  ;;  %v662_v14 = vadd.f32 %v2674_v32, %v2789_v1 }
 0x17b   :  { %1277 = vadd.xlane.f32.xlu0 %v1276_v44  ;;  %2098 = vtanh.f32 %v723_v47  ;;  %v1282_v44 = vsel %vm49_vm0, %v986_v22, 0.0  ;;  %v399_v1 = vpop.f32.mrf.mxu1 }
 0x17c   :  { %v1242_v19 = vpop.xlane.xlu1 %1241  ;;  %v1180_v23 = vsel %vm49_vm0, %v952_v8, 0.0 }
 0x17d   :  { %v1710_v49 = vperm.slane %v1242_v19, %v2774_v24  ;;  %v1146_v25 = vpop.xlane.xlu2 %1145 }
 0x17e   :  { %v1648_v38 = vperm.slane %v1146_v25, %v2774_v24  ;;  %v2857_v39 = vpop.xlane.xlu0 %1247 }
 0x17f   :  { %v2854_v7 = vsel %vm1568_vm6, %v1710_v49, %v1709_v51  ;;  %v757_v51 = vadd.f32 %v2744_v59, %v579_v40  ;;  %v2095_v58 = vpop.eup %2094 }
 0x180   :  { %v1649_v34 = vsel %vm1568_vm6, %v1648_v38, %v2807_v26  ;;  %v985_v13 = vmul.f32 %v2649_v2, %v2095_v58  ;;  %v582_v45 = vpop.f32.mrf.mxu3  ;;  %v2097_v3 = vpop.eup %2096 }
 0x181   :  { %1187 = vadd.xlane.f32.xlu1 %v1186_v42  ;;  %v1651_v57 = vsel %vm1572_vm7, %v1650_v37, %v1649_v34  ;;  %2100 = vtanh.f32 %v757_v51  ;;  %v2099_v49 = vpop.eup %2098  ;;  %v924_v31 = vmul.f32 %v2649_v2, %v2097_v3  ;;  %v695_v51 = vadd.f32 %v2366_v33, %v2839_v5 }
 0x182   :  { %1367 = vadd.xlane.f32.xlu2 %v1366_v11  ;;  %2102 = vtanh.f32 %v727_v0  ;;  %v1279_v40 = vsel %vm49_vm0, %v985_v13, 0.0  ;;  %v983_v46 = vmul.f32 %v2649_v2, %v2099_v49  ;;  %v2924_v3 = vadd.s32 4294967216, %v2620_v28 }
 0x183   :  { %1373 = vadd.xlane.f32.xlu0 %v1372_v54  ;;  %2104 = vtanh.f32 %v662_v14  ;;  %v1096_v47 = vsel %vm49_vm0, %v924_v31, 0.0  ;;  %v758_v54 = vadd.f32 %v2744_v59, %v582_v45  ;;  %v696_v31 = vadd.f32 %v2366_v33, %v2868_v17  ;;  %v402_v17 = vpop.f32.mrf.mxu1 }
 0x184   :  { %v1152_v26 = vpop.xlane.xlu1 %1151  ;;  %2106 = vtanh.f32 %v663_v18 }
 0x185   :  { %v1652_v61 = vperm.slane %v1152_v26, %v2873_v56  ;;  %v1335_v4 = vpop.xlane.xlu2 %1334  ;;  %v1273_v26 = vsel %vm49_vm0, %v983_v46, 0.0 }
 0x186   :  { %v1770_v16 = vperm.slane %v1335_v4, %v2778_v48  ;;  %v2884_v62 = vpop.xlane.xlu0 %1157  ;;  %v2917_v4 = vadd.s32 4294967224, %v2620_v28 }
 0x187   :  { %v2881_v10 = vsel %vm1576_vm8, %v1652_v61, %v1651_v57  ;;  %v2101_v25 = vpop.eup %2100  ;;  %v492_v61 = vpop.f32.mrf.mxu2 }
 0x188   :  { %v1771_v19 = vsel %vm1564_vm5, %v1770_v16, %v1769_v52  ;;  %v697_v52 = vadd.f32 %v2366_v33, %v399_v1  ;;  %v1017_v42 = vmul.f32 %v2649_v2, %v2101_v25  ;;  %v2103_v34 = vpop.eup %2102  ;;  %v585_v58 = vpop.f32.mrf.mxu3 }
 0x189   :  { %1283 = vadd.xlane.f32.xlu1 %v1282_v44  ;;  %v2105_v53 = vpop.eup %2104  ;;  %v987_v0 = vmul.f32 %v2649_v2, %v2103_v34  ;;  %v303_v16 = vpop.f32.mrf.mxu0  ;;  %v728_v44 = vadd.f32 %v2370_v35, %v492_v61  ;;  %v698_v61 = vadd.f32 %v2366_v33, %v402_v17 }
 0x18a   :  { %1181 = vadd.xlane.f32.xlu2 %v1180_v23  ;;  %v2107_v29 = vpop.eup %2106  ;;  %2108 = vtanh.f32 %v697_v52  ;;  %v1375_v22 = vsel %vm49_vm0, %v1017_v42, 0.0  ;;  %v922_v14 = vmul.f32 %v2649_v2, %v2105_v53  ;;  %v1579_v23 = vperm.slane %v2836_v50, %v2917_v4 }
 0x18b   :  { %1280 = vadd.xlane.f32.xlu0 %v1279_v40  ;;  %2110 = vtanh.f32 %v695_v51  ;;  %v923_v45 = vmul.f32 %v2649_v2, %v2107_v29  ;;  %v1285_v49 = vsel %vm49_vm0, %v987_v0, 0.0  ;;  %v665_v25 = vadd.f32 %v2674_v32, %v303_v16 }
 0x18c   :  { %v1344_v12 = vpop.xlane.xlu1 %1343  ;;  %2112 = vtanh.f32 %v758_v54  ;;  %v1090_v46 = vsel %vm49_vm0, %v922_v14, 0.0  ;;  %v759_v16 = vadd.f32 %v2744_v59, %v585_v58 }
 0x18d   :  { %v1338_v38 = vpop.xlane.xlu2 %1337  ;;  %v1776_v11 = vperm.slane %v1344_v12, %v2873_v56  ;;  %2114 = vtanh.f32 %v728_v44  ;;  %v1093_v52 = vsel %vm49_vm0, %v923_v45, 0.0 }
 0x18e   :  { %v1772_v6 = vperm.slane %v1338_v38, %v2774_v24  ;;  %v2899_v37 = vpop.xlane.xlu0 %1349  ;;  %2116 = vtanh.f32 %v665_v25 }
 0x18f   :  { %2118 = vtanh.f32 %v696_v31 }
 0x190   :  { %v1773_v57 = vsel %vm1568_vm6, %v1772_v6, %v1771_v19  ;;  %v2109_v40 = vpop.eup %2108 }
 0x191   :  { %1097 = vadd.xlane.f32.xlu1 %v1096_v47  ;;  %v1775_v60 = vsel %vm1572_vm7, %v1774_v20, %v1773_v57  ;;  %v2111_v50 = vpop.eup %2110  ;;  %v588_v20 = vpop.f32.mrf.mxu3  ;;  %v957_v47 = vmul.f32 %v2649_v2, %v2109_v40 }
 0x192   :  { %1274 = vadd.xlane.f32.xlu2 %v1273_v26  ;;  %v2914_v5 = vsel %vm1576_vm8, %v1776_v11, %v1775_v60  ;;  %v2113_v42 = vpop.eup %2112  ;;  %v955_v51 = vmul.f32 %v2649_v2, %v2111_v50  ;;  %v760_v11 = vadd.f32 %v2744_v59, %v588_v20  ;;  %v495_v57 = vpop.f32.mrf.mxu2  ;;  %v1714_v26 = vperm.slane %v2857_v39, %v2873_v56 }
 0x193   :  { %1376 = vadd.xlane.f32.xlu0 %v1375_v22  ;;  %v1018_v60 = vmul.f32 %v2649_v2, %v2113_v42  ;;  %v1195_v29 = vsel %vm49_vm0, %v957_v47, 0.0  ;;  %v2115_v22 = vpop.eup %2114 }
 0x194   :  { %v1062_v8 = vpop.xlane.xlu1 %1061  ;;  %v1189_v45 = vsel %vm49_vm0, %v955_v51, 0.0  ;;  %v2117_v44 = vpop.eup %2116  ;;  %2120 = vtanh.f32 %v760_v11 }
 0x195   :  { %v1056_v13 = vpop.xlane.xlu2 %1055  ;;  %v1583_v1 = vperm.slane %v1062_v8, %v2924_v3  ;;  %v1378_v39 = vsel %vm49_vm0, %v1018_v60, 0.0  ;;  %2122 = vtanh.f32 %v698_v61  ;;  %v925_v25 = vmul.f32 %v2649_v2, %v2117_v44  ;;  %v405_v51 = vpop.f32.mrf.mxu1 }
 0x196   :  { %v1575_v18 = vperm.slane %v1056_v13, %v2873_v56  ;;  %v2927_v19 = vpop.xlane.xlu0 %1067  ;;  %v306_v13 = vpop.f32.mrf.mxu0  ;;  %2124 = vtanh.f32 %v759_v16 }
 0x197   :  { %v666_v50 = vadd.f32 %v2674_v32, %v306_v13 }
 0x198   :  { %v1577_v12 = vsel %vm1576_vm8, %v1575_v18, %v2833_v21 }
 0x199   :  { %1286 = vadd.xlane.f32.xlu1 %v1285_v49  ;;  %v1581_v38 = vsel %vm1580_vm9, %v1579_v23, %v1577_v12  ;;  %v2119_v23 = vpop.eup %2118  ;;  %v591_v58 = vpop.f32.mrf.mxu3  ;;  %v2969_v12 = vadd.s32 4294967208, %v2620_v28 }
 0x19a   :  { %1091 = vadd.xlane.f32.xlu2 %v1090_v46  ;;  %v2942_v6 = vsel %vm1584_vm10, %v1583_v1, %v1581_v38  ;;  %v729_v1 = vadd.f32 %v2370_v35, %v495_v57  ;;  %v956_v46 = vmul.f32 %v2649_v2, %v2119_v23  ;;  %v2121_v20 = vpop.eup %2120  ;;  %v498_v47 = vpop.f32.mrf.mxu2  ;;  %v1099_v57 = vsel %vm49_vm0, %v925_v25, 0.0 }
 0x19b   :  { %1094 = vadd.xlane.f32.xlu0 %v1093_v52  ;;  %v1656_v52 = vperm.slane %v2884_v62, %v2924_v3  ;;  %v730_v23 = vadd.f32 %v2370_v35, %v498_v47  ;;  %v699_v25 = vadd.f32 %v2366_v33, %v405_v51 }
 0x19c   :  { %v1251_v21 = vpop.xlane.xlu1 %1250  ;;  %2126 = vtanh.f32 %v729_v1  ;;  %v1192_v62 = vsel %vm49_vm0, %v956_v46, 0.0 }
 0x19d   :  { %v1245_v34 = vpop.xlane.xlu2 %1244  ;;  %v1716_v8 = vperm.slane %v1251_v21, %v2917_v4  ;;  %v761_v21 = vadd.f32 %v2744_v59, %v591_v58  ;;  %2128 = vtanh.f32 %v666_v50 }
 0x19e   :  { %v1712_v53 = vperm.slane %v1245_v34, %v2825_v30  ;;  %v2948_v54 = vpop.xlane.xlu0 %1256 }
 0x19f   :  { %2130 = vtanh.f32 %v761_v21 }
 0x1a0   :  { %v1713_v0 = vsel %vm1572_vm7, %v1712_v53, %v2854_v7  ;;  %v988_v7 = vmul.f32 %v2649_v2, %v2115_v22  ;;  %v2123_v53 = vpop.eup %2122 }
 0x1a1   :  { %1196 = vadd.xlane.f32.xlu1 %v1195_v29  ;;  %v1715_v14 = vsel %vm1576_vm8, %v1714_v26, %v1713_v0  ;;  %v2125_v26 = vpop.eup %2124  ;;  %v309_v29 = vpop.f32.mrf.mxu0 }
 0x1a2   :  { %1190 = vadd.xlane.f32.xlu2 %v1189_v45  ;;  %v2963_v18 = vsel %vm1580_vm9, %v1716_v8, %v1715_v14  ;;  %v1288_v42 = vsel %vm49_vm0, %v988_v7, 0.0  ;;  %v958_v8 = vmul.f32 %v2649_v2, %v2123_v53  ;;  %v667_v0 = vadd.f32 %v2674_v32, %v309_v29  ;;  %v501_v46 = vpop.f32.mrf.mxu2 }
 0x1a3   :  { %1379 = vadd.xlane.f32.xlu0 %v1378_v39  ;;  %v1019_v14 = vmul.f32 %v2649_v2, %v2125_v26  ;;  %v1780_v45 = vperm.slane %v2899_v37, %v2924_v3  ;;  %v2127_v39 = vpop.eup %2126 }
 0x1a4   :  { %v1161_v49 = vpop.xlane.xlu1 %1160  ;;  %v2129_v58 = vpop.eup %2128  ;;  %2132 = vtanh.f32 %v667_v0  ;;  %v989_v21 = vmul.f32 %v2649_v2, %v2127_v39 }
 0x1a5   :  { %v1155_v40 = vpop.xlane.xlu2 %1154  ;;  %v1658_v17 = vperm.slane %v1161_v49, %v2969_v12  ;;  %v2131_v37 = vpop.eup %2130  ;;  %v1381_v50 = vsel %vm49_vm0, %v1019_v14, 0.0  ;;  %2134 = vtanh.f32 %v730_v23  ;;  %v926_v51 = vmul.f32 %v2649_v2, %v2129_v58 }
 0x1a6   :  { %v1654_v31 = vperm.slane %v1155_v40, %v2917_v4  ;;  %v2972_v38 = vpop.xlane.xlu0 %1166  ;;  %v594_v40 = vpop.f32.mrf.mxu3  ;;  %2136 = vtanh.f32 %v699_v25  ;;  %v1291_v29 = vsel %vm49_vm0, %v989_v21, 0.0 }
 0x1a7   :  { %v762_v0 = vadd.f32 %v2744_v59, %v594_v40 }
 0x1a8   :  { %v1655_v34 = vsel %vm1580_vm9, %v1654_v31, %v2881_v10  ;;  %v1020_v10 = vmul.f32 %v2649_v2, %v2121_v20  ;;  %v1198_v31 = vsel %vm49_vm0, %v958_v8, 0.0 }
 0x1a9   :  { %1289 = vadd.xlane.f32.xlu1 %v1288_v42  ;;  %v1657_v11 = vsel %vm1584_vm10, %v1656_v52, %v1655_v34  ;;  %v408_v42 = vpop.f32.mrf.mxu1  ;;  %v312_v47 = vpop.f32.mrf.mxu0  ;;  %v1021_v34 = vmul.f32 %v2649_v2, %v2131_v37 }
 0x1aa   :  { %1100 = vadd.xlane.f32.xlu2 %v1099_v57  ;;  %v2987_v60 = vsel %vm1588_vm11, %v1658_v17, %v1657_v11  ;;  %v1384_v44 = vsel %vm49_vm0, %v1020_v10, 0.0  ;;  %v700_v11 = vadd.f32 %v2366_v33, %v408_v42  ;;  %v3018_v57 = vadd.s32 4294967192, %v2620_v28 }
 0x1ab   :  { %1193 = vadd.xlane.f32.xlu0 %v1192_v62  ;;  %v668_v10 = vadd.f32 %v2674_v32, %v312_v47  ;;  %v1387_v14 = vsel %vm49_vm0, %v1021_v34, 0.0  ;;  %v1720_v42 = vperm.slane %v2948_v54, %v2969_v12 }
 0x1ac   :  { %v1353_v22 = vpop.xlane.xlu1 %1352  ;;  %2138 = vtanh.f32 %v700_v11 }
 0x1ad   :  { %v1347_v61 = vpop.xlane.xlu2 %1346  ;;  %v1782_v49 = vperm.slane %v1353_v22, %v2969_v12  ;;  %v2133_v22 = vpop.eup %2132  ;;  %2140 = vtanh.f32 %v668_v10 }
 0x1ae   :  { %v1778_v16 = vperm.slane %v1347_v61, %v2917_v4  ;;  %v2993_v13 = vpop.xlane.xlu0 %1358  ;;  %v597_v23 = vpop.f32.mrf.mxu3  ;;  %2142 = vtanh.f32 %v762_v0 }
 0x1b0   :  { %v1779_v7 = vsel %vm1580_vm9, %v1778_v16, %v2914_v5  ;;  %v3011_v5 = vadd.s32 4294967200, %v2620_v28 }
 0x1b1   :  { %1385 = vadd.xlane.f32.xlu1 %v1384_v44  ;;  %v1781_v1 = vsel %vm1584_vm10, %v1780_v45, %v1779_v7  ;;  %v2135_v45 = vpop.eup %2134  ;;  %v504_v7 = vpop.f32.mrf.mxu2 }
 0x1b2   :  { %1199 = vadd.xlane.f32.xlu2 %v1198_v31  ;;  %v3008_v52 = vsel %vm1588_vm11, %v1782_v49, %v1781_v1  ;;  %v1591_v26 = vperm.slane %v2927_v19, %v3011_v5  ;;  %v1102_v19 = vsel %vm49_vm0, %v926_v51, 0.0  ;;  %v2137_v39 = vpop.eup %2136  ;;  %v411_v58 = vpop.f32.mrf.mxu1  ;;  %v990_v25 = vmul.f32 %v2649_v2, %v2135_v45 }
 0x1b3   :  { %1382 = vadd.xlane.f32.xlu0 %v1381_v50  ;;  %v763_v1 = vadd.f32 %v2744_v59, %v597_v23  ;;  %v959_v50 = vmul.f32 %v2649_v2, %v2137_v39  ;;  %v2139_v21 = vpop.eup %2138  ;;  %v701_v47 = vadd.f32 %v2366_v33, %v411_v58  ;;  %v731_v51 = vadd.f32 %v2370_v35, %v501_v46  ;;  %v315_v11 = vpop.f32.mrf.mxu0 }
 0x1b4   :  { %v1071_v20 = vpop.xlane.xlu1 %1070 }
 0x1b5   :  { %v1065_v17 = vpop.xlane.xlu2 %1064  ;;  %v1595_v61 = vperm.slane %v1071_v20, %v3018_v57  ;;  %2144 = vtanh.f32 %v763_v1  ;;  %v1201_v54 = vsel %vm49_vm0, %v959_v50, 0.0  ;;  %v669_v1 = vadd.f32 %v2674_v32, %v315_v11 }
 0x1b6   :  { %v1587_v53 = vperm.slane %v1065_v17, %v2969_v12  ;;  %v3021_v62 = vpop.xlane.xlu0 %1076  ;;  %2146 = vtanh.f32 %v701_v47 }
 0x1b7   :  { %2148 = vtanh.f32 %v731_v51 }
 0x1b8   :  { %v1589_v8 = vsel %vm1588_vm11, %v1587_v53, %v2942_v6  ;;  %v927_v6 = vmul.f32 %v2649_v2, %v2133_v22  ;;  %v1294_v2 = vsel %vm49_vm0, %v990_v25, 0.0 }
 0x1b9   :  { %1292 = vadd.xlane.f32.xlu1 %v1291_v29  ;;  %v1593_v16 = vsel %vm1592_vm12, %v1591_v26, %v1589_v8  ;;  %v2141_v26 = vpop.eup %2140  ;;  %v507_v23 = vpop.f32.mrf.mxu2 }
 0x1ba   :  { %1388 = vadd.xlane.f32.xlu2 %v1387_v14  ;;  %v3035_v44 = vsel %vm1596_vm13, %v1595_v61, %v1593_v16  ;;  %v1105_v20 = vsel %vm49_vm0, %v927_v6, 0.0  ;;  %v2143_v22 = vpop.eup %2142  ;;  %v600_v61 = vpop.f32.mrf.mxu3  ;;  %v732_v16 = vadd.f32 %v2370_v35, %v504_v7  ;;  %v3067_v14 = vadd.s32 4294967184, %v2620_v28 }
 0x1bb   :  { %1103 = vadd.xlane.f32.xlu0 %v1102_v19  ;;  %v2145_v58 = vpop.eup %2144 }
 0x1bc   :  { %v1260_v49 = vpop.xlane.xlu1 %1259  ;;  %2150 = vtanh.f32 %v732_v16 }
 0x1bd   :  { %v1254_v40 = vpop.xlane.xlu2 %1253  ;;  %v1722_v17 = vperm.slane %v1260_v49, %v3011_v5  ;;  %v1662_v49 = vperm.slane %v2972_v38, %v3018_v57  ;;  %v2147_v38 = vpop.eup %2146 }
 0x1be   :  { %v1718_v31 = vperm.slane %v1254_v40, %v2924_v3  ;;  %v3041_v37 = vpop.xlane.xlu0 %1265  ;;  %v764_v40 = vadd.f32 %v2744_v59, %v600_v61  ;;  %v2149_v47 = vpop.eup %2148  ;;  %v733_v61 = vadd.f32 %v2370_v35, %v507_v23 }
 0x1c0   :  { %v1719_v34 = vsel %vm1584_vm10, %v1718_v31, %v2963_v18  ;;  %v3061_v18 = vld [vmem:[%s3371_s5] ss:$0 sm:$0xff]  ;;  %v414_v31 = vpop.f32.mrf.mxu1  ;;  %2152 = vtanh.f32 %v764_v40  ;;  %s2251_s5 = smov [#allocation5]  }
 0x1c1   :  { %1106 = vadd.xlane.f32.xlu1 %v1105_v20  ;;  %v1721_v53 = vsel %vm1588_vm11, %v1720_v42, %v1719_v34  ;;  %v960_v46 = vmul.f32 %v3061_v18, %v2139_v21  ;;  %v928_v0 = vmul.f32 %v3061_v18, %v2141_v26  ;;  %v1022_v39 = vmul.f32 %v3061_v18, %v2143_v22  ;;  %s1867_s23 = sshll.u32 %s2251_s5, 4  ;;  %s1868_s23 = int_to_ptr.vmem [resolvable:$true] %s1867_s23 }
 0x1c2   :  { %1295 = vadd.xlane.f32.xlu2 %v1294_v2  ;;  %v3056_v29 = vsel %vm1592_vm12, %v1722_v17, %v1721_v53  ;;  %v318_v17 = vpop.f32.mrf.mxu0  ;;  %v1023_v34 = vmul.f32 %v3061_v18, %v2145_v58  ;;  %2154 = vtanh.f32 %v669_v1  ;;  %v961_v11 = vmul.f32 %v3061_v18, %v2147_v38 }
 0x1c3   :  { %1202 = vadd.xlane.f32.xlu0 %v1201_v54  ;;  %v1204_v6 = vsel %vm49_vm0, %v960_v46, 0.0  ;;  %v1108_v42 = vsel %vm49_vm0, %v928_v0, 0.0  ;;  %v1390_v20 = vsel %vm49_vm0, %v1022_v39, 0.0  ;;  %v670_v53 = vadd.f32 %v2674_v32, %v318_v17  ;;  %v2151_v46 = vpop.eup %2150  ;;  %v510_v39 = vpop.f32.mrf.mxu2 }
 0x1c4   :  { %v1170_v10 = vpop.xlane.xlu1 %1169  ;;  %v991_v54 = vmul.f32 %v3061_v18, %v2149_v47  ;;  %v1786_v22 = vperm.slane %v2993_v13, %v3018_v57 }
 0x1c5   :  { %v1164_v8 = vpop.xlane.xlu2 %1163  ;;  %v1664_v7 = vperm.slane %v1170_v10, %v3067_v14  ;;  %v1393_v10 = vsel %vm49_vm0, %v1023_v34, 0.0  ;;  %2156 = vtanh.f32 %v670_v53 }
 0x1c6   :  { %v1660_v45 = vperm.slane %v1164_v8, %v3011_v5  ;;  %v1362_v19 = vpop.xlane.xlu0 %1361  ;;  %v603_v8 = vpop.f32.mrf.mxu3  ;;  %v1297_v58 = vsel %vm49_vm0, %v991_v54, 0.0  ;;  %2158 = vtanh.f32 %v733_v61 }
 0x1c7   :  { %v1788_v0 = vperm.slane %v1362_v19, %v3067_v14  ;;  %v2153_v13 = vpop.eup %2152 }
 0x1c8   :  { %v1661_v25 = vsel %vm1592_vm12, %v1660_v45, %v2987_v60  ;;  %v702_v45 = vadd.f32 %v2366_v33, %v414_v31  ;;  %v2155_v19 = vpop.eup %2154  ;;  %v417_v40 = vpop.f32.mrf.mxu1 }
 0x1c9   :  { %1205 = vadd.xlane.f32.xlu1 %v1204_v6  ;;  %v1663_v50 = vsel %vm1596_vm13, %v1662_v49, %v1661_v25  ;;  %v1207_v6 = vsel %vm49_vm0, %v961_v11, 0.0  ;;  %v3110_v25 = vadd.s32 4294967176, %v2620_v28  ;;  %v929_v47 = vmul.f32 %v3061_v18, %v2155_v19 }
 0x1ca   :  { %1109 = vadd.xlane.f32.xlu2 %v1108_v42  ;;  %v3083_v21 = vsel %vm1600_vm14, %v1664_v7, %v1663_v50  ;;  %v992_v7 = vmul.f32 %v3061_v18, %v2151_v46  ;;  %2160 = vtanh.f32 %v702_v45  ;;  %v321_v1 = vpop.f32.mrf.mxu0  ;;  %v1024_v50 = vmul.f32 %v3061_v18, %v2153_v13 }
 0x1cb   :  { %1391 = vadd.xlane.f32.xlu0 %v1390_v20  ;;  %v703_v42 = vadd.f32 %v2366_v33, %v417_v40  ;;  %v1603_v17 = vperm.slane %v3021_v62, %v3110_v25  ;;  %v671_v11 = vadd.f32 %v2674_v32, %v321_v1  ;;  %v1111_v62 = vsel %vm49_vm0, %v929_v47, 0.0 }
 0x1cc   :  { %v3085_v60 = vpop.xlane.xlu1 %1079  ;;  %v1300_v34 = vsel %vm49_vm0, %v992_v7, 0.0 }
 0x1cd   :  { %v1356_v51 = vpop.xlane.xlu2 %1355  ;;  %2162 = vtanh.f32 %v703_v42 }
 0x1ce   :  { %v1784_v2 = vperm.slane %v1356_v51, %v3011_v5  ;;  %v3091_v26 = vpop.xlane.xlu0 %1175  ;;  %v2157_v51 = vpop.eup %2156  ;;  %2164 = vtanh.f32 %v671_v11 }
 0x1cf   :  { %v606_v46 = vpop.f32.mrf.mxu3 }
 0x1d0   :  { %v1785_v16 = vsel %vm1592_vm12, %v1784_v2, %v3008_v52  ;;  %v765_v2 = vadd.f32 %v2744_v59, %v603_v8  ;;  %v1668_v8 = vperm.slane %v3091_v26, %v2620_v28  ;;  %v1726_v26 = vperm.slane %v3041_v37, %v3067_v14 }
 0x1d1   :  { %1394 = vadd.xlane.f32.xlu1 %v1393_v10  ;;  %v1787_v49 = vsel %vm1596_vm13, %v1786_v22, %v1785_v16  ;;  %v1396_v22 = vsel %vm49_vm0, %v1024_v50, 0.0  ;;  %v2159_v10 = vpop.eup %2158 }
 0x1d2   :  { %1208 = vadd.xlane.f32.xlu2 %v1207_v6  ;;  %v3106_v23 = vsel %vm1600_vm14, %v1788_v0, %v1787_v49  ;;  %v2161_v61 = vpop.eup %2160  ;;  %v513_v0 = vpop.f32.mrf.mxu2  ;;  %2166 = vtanh.f32 %v765_v2  ;;  %v993_v13 = vmul.f32 %v3061_v18, %v2159_v10 }
 0x1d3   :  { %1298 = vadd.xlane.f32.xlu0 %v1297_v58  ;;  %v420_v49 = vpop.f32.mrf.mxu1  ;;  %v766_v58 = vadd.f32 %v2744_v59, %v606_v46  ;;  %v962_v1 = vmul.f32 %v3061_v18, %v2161_v61  ;;  %v2163_v50 = vpop.eup %2162 }
 0x1d4   :  { %v1269_v52 = vpop.xlane.xlu1 %1268  ;;  %v704_v42 = vadd.f32 %v2366_v33, %v420_v49  ;;  %v2165_v11 = vpop.eup %2164 }
 0x1d5   :  { %v1074_v31 = vpop.xlane.xlu2 %1073  ;;  %2168 = vtanh.f32 %v766_v58  ;;  %v1210_v33 = vsel %vm49_vm0, %v962_v1, 0.0  ;;  %v931_v10 = vmul.f32 %v3061_v18, %v2165_v11  ;;  %v324_v46 = vpop.f32.mrf.mxu0 }
 0x1d6   :  { %v1599_v38 = vperm.slane %v1074_v31, %v3067_v14  ;;  %v3115_v20 = vpop.xlane.xlu0 %1085  ;;  %2170 = vtanh.f32 %v704_v42 }
 0x1d7   :  { %v609_v2 = vpop.f32.mrf.mxu3 }
 0x1d8   :  { %v1601_v53 = vsel %vm1600_vm14, %v1599_v38, %v3035_v44  ;;  %v930_v44 = vmul.f32 %v3061_v18, %v2157_v51  ;;  %v1728_v38 = vperm.slane %v1269_v52, %v3110_v25  ;;  %v1303_v51 = vsel %vm49_vm0, %v993_v13, 0.0 }
 0x1d9   :  { %1301 = vadd.xlane.f32.xlu1 %v1300_v34  ;;  %v3126_v54 = vsel %vm1604_vm15, %v1603_v17, %v1601_v53  ;;  %v734_v17 = vadd.f32 %v2370_v35, %v510_v39  ;;  %v2167_v53 = vpop.eup %2166  ;;  %v672_v13 = vadd.f32 %v2674_v32, %v324_v46 }
 0x1da   :  { %1397 = vadd.xlane.f32.xlu2 %v1396_v22  ;;  %v1114_v31 = vsel %vm49_vm0, %v930_v44, 0.0  ;;  %v516_v39 = vpop.f32.mrf.mxu2  ;;  %v1025_v44 = vmul.f32 %v3061_v18, %v2167_v53  ;;  %v753_v53 = vadd.f32 %v2387_v55, %v2671_v36 }
 0x1db   :  { %1112 = vadd.xlane.f32.xlu0 %v1111_v62  ;;  %2172 = vtanh.f32 %v734_v17  ;;  %v735_v62 = vadd.f32 %v2370_v35, %v513_v0  ;;  %v736_v49 = vadd.f32 %v2370_v35, %v516_v39  ;;  %v1117_v0 = vsel %vm49_vm0, %v931_v10, 0.0 }
 0x1dc   :  { %v1179_v16 = vpop.xlane.xlu1 %1178 }
 0x1dd   :  { %v1669_v45 = vperm.slane %v1179_v16, %v2625_v41  ;;  %v1263_v6 = vpop.xlane.xlu2 %1262  ;;  %2174 = vtanh.f32 %v735_v62  ;;  %v327_v36 = vpop.f32.mrf.mxu0 }
 0x1de   :  { %v1724_v40 = vperm.slane %v1263_v6, %v3018_v57  ;;  %v3140_v7 = vpop.xlane.xlu0 %1370  ;;  %2176 = vtanh.f32 %v736_v49 }
 0x1df   :  { %v3137_v19 = vsel %vm1548_vm1, %v1669_v45, %v1668_v8  ;;  %v2169_v45 = vpop.eup %2168  ;;  %2178 = vtanh.f32 %v672_v13  ;;  %v612_v42 = vpop.f32.mrf.mxu3  ;;  %v1793_v49 = vperm.slane %v3140_v7, %v2625_v41 }
 0x1e0   :  { %v1725_v47 = vsel %vm1596_vm13, %v1724_v40, %v3056_v29  ;;  %v963_v29 = vmul.f32 %v3061_v18, %v2163_v50  ;;  %v2171_v58 = vpop.eup %2170  ;;  %v1399_v40 = vsel %vm49_vm0, %v1025_v44, 0.0  ;;  %v767_v50 = vadd.f32 %v2744_v59, %v609_v2 }
 0x1e1   :  { %1115 = vadd.xlane.f32.xlu1 %v1114_v31  ;;  %v1727_v34 = vsel %vm1600_vm14, %v1726_v26, %v1725_v47  ;;  %v2173_v1 = vpop.eup %2172  ;;  %v1026_v31 = vmul.f32 %v3061_v18, %v2169_v45  ;;  %v673_v45 = vadd.f32 %v2674_v32, %v327_v36 }
 0x1e2   :  { %v3154_v37 = vsel %vm1604_vm15, %v1728_v38, %v1727_v34  ;;  %1304 = vadd.xlane.f32.xlu2 %v1303_v51  ;;  %v1213_v8 = vsel %vm49_vm0, %v963_v29, 0.0  ;;  %v1606_v38 = vperm.slane %v3085_v60, %v2620_v28  ;;  %v994_v34 = vmul.f32 %v3061_v18, %v2173_v1 }
 0x1e3   :  { %1211 = vadd.xlane.f32.xlu0 %v1210_v33  ;;  %v1609_v51 = vperm.slane %v3115_v20, %v2666_v27  ;;  %v1402_v11 = vsel %vm49_vm0, %v1026_v31, 0.0  ;;  %v2175_v33 = vpop.eup %2174  ;;  %v768_v60 = vadd.f32 %v2744_v59, %v612_v42  ;;  %2180 = vtanh.f32 %v767_v50 }
 0x1e4   :  { %v3157_v52 = vpop.xlane.xlu1 %1271  ;;  %v2177_v10 = vpop.eup %2176  ;;  %v1306_v20 = vsel %vm49_vm0, %v994_v34, 0.0  ;;  %2182 = vtanh.f32 %v753_v53 }
 0x1e5   :  { %v1173_v22 = vpop.xlane.xlu2 %1172  ;;  %v2179_v55 = vpop.eup %2178  ;;  %2184 = vtanh.f32 %v768_v60 }
 0x1e6   :  { %v1666_v61 = vperm.slane %v1173_v22, %v3110_v25  ;;  %v3163_v16 = vpop.xlane.xlu0 %1184  ;;  %2186 = vtanh.f32 %v673_v45 }
 0x1e7   :  { %v615_v42 = vpop.f32.mrf.mxu3 }
 0x1e8   :  { %v3170_v6 = vsel %vm1604_vm15, %v1666_v61, %v3083_v21  ;;  %v964_v21 = vmul.f32 %v3061_v18, %v2171_v58  ;;  %v995_v61 = vmul.f32 %v3061_v18, %v2175_v33  ;;  %v932_v58 = vmul.f32 %v3061_v18, %v2179_v55 }
 0x1e9   :  { %1214 = vadd.xlane.f32.xlu1 %v1213_v8  ;;  %v996_v8 = vmul.f32 %v3061_v18, %v2177_v10 }
 0x1ea   :  { %1118 = vadd.xlane.f32.xlu2 %v1117_v0  ;;  %v1216_v22 = vsel %vm49_vm0, %v964_v21, 0.0  ;;  %v1309_v1 = vsel %vm49_vm0, %v995_v61, 0.0  ;;  %v1120_v7 = vsel %vm49_vm0, %v932_v58, 0.0 }
 0x1eb   :  { %1400 = vadd.xlane.f32.xlu0 %v1399_v40  ;;  %v1312_v32 = vsel %vm49_vm0, %v996_v8, 0.0 }
 0x1ec   :  { %v1089_v26 = vpop.xlane.xlu1 %1088 }
 0x1ed   :  { %v1083_v35 = vpop.xlane.xlu2 %1082  ;;  %v1611_v29 = vperm.slane %v1089_v26, %v2702_v63  ;;  %v2181_v26 = vpop.eup %2180 }
 0x1ee   :  { %v1607_v47 = vperm.slane %v1083_v35, %v2625_v41  ;;  %v3181_v17 = vpop.xlane.xlu0 %1277  ;;  %v2183_v21 = vpop.eup %2182 }
 0x1ef   :  { %v2185_v50 = vpop.eup %2184  ;;  %v1733_v45 = vperm.slane %v3181_v17, %v2666_v27 }
 0x1f0   :  { %v1608_v2 = vsel %vm1548_vm1, %v1607_v47, %v1606_v38  ;;  %v1027_v47 = vmul.f32 %v3061_v18, %v2181_v26 }
 0x1f1   :  { %1403 = vadd.xlane.f32.xlu1 %v1402_v11  ;;  %v1610_v39 = vsel %vm1552_vm2, %v1609_v51, %v1608_v2  ;;  %v1013_v51 = vmul.f32 %v3061_v18, %v2183_v21  ;;  %v769_v11 = vadd.f32 %v2744_v59, %v615_v42  ;;  %v1673_v2 = vperm.slane %v3163_v16, %v2702_v63 }
 0x1f2   :  { %1217 = vadd.xlane.f32.xlu2 %v1216_v22  ;;  %v3196_v46 = vsel %vm1556_vm3, %v1611_v29, %v1610_v39  ;;  %v1028_v29 = vmul.f32 %v3061_v18, %v2185_v50  ;;  %v1405_v60 = vsel %vm49_vm0, %v1027_v47, 0.0  ;;  %v2187_v39 = vpop.eup %2186 }
 0x1f3   :  { %1307 = vadd.xlane.f32.xlu0 %v1306_v20  ;;  %v1363_v59 = vsel %vm49_vm0, %v1013_v51, 0.0  ;;  %2188 = vtanh.f32 %v769_v11  ;;  %v933_v61 = vmul.f32 %v3061_v18, %v2187_v39 }
 0x1f4   :  { %v1188_v62 = vpop.xlane.xlu1 %1187  ;;  %v1408_v55 = vsel %vm49_vm0, %v1028_v29, 0.0 }
 0x1f5   :  { %v1368_v44 = vpop.xlane.xlu2 %1367  ;;  %v1675_v22 = vperm.slane %v1188_v62, %v2707_v9  ;;  %v1730_v62 = vperm.slane %v3157_v52, %v2620_v28 }
 0x1f6   :  { %v1792_v13 = vperm.slane %v1368_v44, %v2620_v28  ;;  %v1374_v0 = vpop.xlane.xlu0 %1373 }
 0x1f7   :  { %v1795_v40 = vperm.slane %v1374_v0, %v2666_v27 }
 0x1f8   :  { %v1794_v31 = vsel %vm1548_vm1, %v1793_v49, %v1792_v13  ;;  %v1123_v13 = vsel %vm49_vm0, %v933_v61, 0.0 }
 0x1f9   :  { %1310 = vadd.xlane.f32.xlu1 %v1309_v1  ;;  %v1796_v35 = vsel %vm1552_vm2, %v1795_v40, %v1794_v31  ;;  %v2189_v0 = vpop.eup %2188 }
 0x1fa   :  { %1313 = vadd.xlane.f32.xlu2 %v1312_v32  ;;  %v1029_v31 = vmul.f32 %v3061_v18, %v2189_v0 }
 0x1fb   :  { %1121 = vadd.xlane.f32.xlu0 %v1120_v7 }
 0x1fc   :  { %v1284_v38 = vpop.xlane.xlu1 %1283 }
 0x1fd   :  { %v1182_v34 = vpop.xlane.xlu2 %1181  ;;  %v1737_v1 = vperm.slane %v1284_v38, %v2707_v9  ;;  %v1411_v38 = vsel %vm49_vm0, %v1029_v31, 0.0  ;;  %vm1823_vm0 = vcmask 1041409  }
 0x1fe   :  { %v1671_v33 = vperm.slane %v1182_v34, %v2666_v27  ;;  %v1281_v53 = vpop.xlane.xlu0 %1280 }
 0x1ff   :  { %v1735_v58 = vperm.slane %v1281_v53, %v2702_v63 }
 0x200   :  { %v1672_v10 = vsel %vm1552_vm2, %v1671_v33, %v3137_v19 }
 0x201   :  { %1406 = vadd.xlane.f32.xlu1 %v1405_v60  ;;  %v1674_v20 = vsel %vm1556_vm3, %v1673_v2, %v1672_v10 }
 0x202   :  { %1364 = vadd.xlane.f32.xlu2 %v1363_v59  ;;  %v1676_v36 = vsel %vm1560_vm4, %v1675_v22, %v1674_v20 }
 0x203   :  { %1409 = vadd.xlane.f32.xlu0 %v1408_v55 }
 0x204   :  { %v1098_v16 = vpop.xlane.xlu1 %1097 }
 0x205   :  { %v1275_v44 = vpop.xlane.xlu2 %1274 }
 0x206   :  { %v1731_v19 = vperm.slane %v1275_v44, %v2625_v41  ;;  %v1377_v8 = vpop.xlane.xlu0 %1376 }
 0x207   :  { %v1797_v49 = vperm.slane %v1377_v8, %v2702_v63 }
 0x208   :  { %v1732_v40 = vsel %vm1548_vm1, %v1731_v19, %v1730_v62  ;;  %vm1825_vm1 = vcmask 1042434  }
 0x209   :  { %1124 = vadd.xlane.f32.xlu1 %v1123_v13  ;;  %v1734_v52 = vsel %vm1552_vm2, %v1733_v45, %v1732_v40  ;;  %v1798_v41 = vsel %vm1556_vm3, %v1797_v49, %v1796_v35  ;;  %v1617_v35 = vperm.slane %v1098_v16, %v2774_v24  ;;  %vm1827_vm2 = vcmask 1043459  }
 0x20a   :  { %v1736_v26 = vsel %vm1556_vm3, %v1735_v58, %v1734_v52  ;;  %vm1829_vm3 = vcmask 1044484  }
 0x20b   :  { %v1738_v27 = vsel %vm1560_vm4, %v1737_v1, %v1736_v26 }
 0x20c   :  { %v1287_v17 = vpop.xlane.xlu1 %1286 }
 0x20d   :  { %v1739_v32 = vperm.slane %v1287_v17, %v2778_v48  ;;  %v1092_v21 = vpop.xlane.xlu2 %1091 }
 0x20e   :  { %v1613_v7 = vperm.slane %v1092_v21, %v2707_v9  ;;  %v1095_v50 = vpop.xlane.xlu0 %1094 }
 0x20f   :  { %v1740_v63 = vsel %vm1564_vm5, %v1739_v32, %v1738_v27  ;;  %v1615_v42 = vperm.slane %v1095_v50, %v2778_v48 }
 0x210   :  { %v1614_v47 = vsel %vm1560_vm4, %v1613_v7, %v3196_v46 }
 0x211   :  { %1412 = vadd.xlane.f32.xlu1 %v1411_v38  ;;  %v1616_v18 = vsel %vm1564_vm5, %v1615_v42, %v1614_v47 }
 0x212   :  { %v1618_v34 = vsel %vm1568_vm6, %v1617_v35, %v1616_v18 }
 0x214   :  { %v1197_v51 = vpop.xlane.xlu1 %1196 }
 0x215   :  { %v1191_v11 = vpop.xlane.xlu2 %1190  ;;  %v1681_v16 = vperm.slane %v1197_v51, %v2825_v30 }
 0x216   :  { %v1677_v33 = vperm.slane %v1191_v11, %v2778_v48  ;;  %v1380_v53 = vpop.xlane.xlu0 %1379 }
 0x217   :  { %v1799_v29 = vperm.slane %v1380_v53, %v2707_v9 }
 0x218   :  { %v1678_v2 = vsel %vm1564_vm5, %v1677_v33, %v1676_v36 }
 0x219   :  { %v1800_v60 = vsel %vm1560_vm4, %v1799_v29, %v1798_v41  ;;  %vm1831_vm4 = vcmask 1045509  }
 0x21c   :  { %v1290_v39 = vpop.xlane.xlu1 %1289 }
 0x21d   :  { %v1741_v22 = vperm.slane %v1290_v39, %v2774_v24  ;;  %v1101_v46 = vpop.xlane.xlu2 %1100 }
 0x21e   :  { %v1619_v20 = vperm.slane %v1101_v46, %v2825_v30  ;;  %v1194_v59 = vpop.xlane.xlu0 %1193 }
 0x21f   :  { %v1742_v10 = vsel %vm1568_vm6, %v1741_v22, %v1740_v63  ;;  %v1679_v55 = vperm.slane %v1194_v59, %v2774_v24 }
 0x220   :  { %v1620_v61 = vsel %vm1572_vm7, %v1619_v20, %v1618_v34 }
 0x221   :  { %v1680_v9 = vsel %vm1568_vm6, %v1679_v55, %v1678_v2 }
 0x222   :  { %v1682_v36 = vsel %vm1572_vm7, %v1681_v16, %v1680_v9 }
 0x224   :  { %v1386_v44 = vpop.xlane.xlu1 %1385 }
 0x225   :  { %v1200_v62 = vpop.xlane.xlu2 %1199  ;;  %v1803_v49 = vperm.slane %v1386_v44, %v2774_v24 }
 0x226   :  { %v1683_v19 = vperm.slane %v1200_v62, %v2873_v56  ;;  %v1383_v8 = vpop.xlane.xlu0 %1382 }
 0x227   :  { %v1801_v45 = vperm.slane %v1383_v8, %v2778_v48 }
 0x228   :  { %v1684_v13 = vsel %vm1576_vm8, %v1683_v19, %v1682_v36 }
 0x229   :  { %v1802_v0 = vsel %vm1564_vm5, %v1801_v45, %v1800_v60  ;;  %v1697_v45 = vperm.slane %v2613_v15, %v3110_v25  ;;  %vm1833_vm5 = vcmask 1046534  }
 0x22a   :  { %v1804_v58 = vsel %vm1568_vm6, %v1803_v49, %v1802_v0  ;;  %vm1835_vm6 = vcmask 1047559  }
 0x22c   :  { %v1293_v40 = vpop.xlane.xlu1 %1292 }
 0x22d   :  { %v1743_v1 = vperm.slane %v1293_v40, %v2825_v30  ;;  %v1389_v52 = vpop.xlane.xlu2 %1388 }
 0x22e   :  { %v1805_v26 = vperm.slane %v1389_v52, %v2825_v30  ;;  %v1104_v27 = vpop.xlane.xlu0 %1103 }
 0x22f   :  { %v1744_v41 = vsel %vm1572_vm7, %v1743_v1, %v1742_v10  ;;  %v1621_v24 = vperm.slane %v1104_v27, %v2873_v56 }
 0x230   :  { %v3274_v17 = vsel %vm1572_vm7, %v1805_v26, %v1804_v58  ;;  %vm1416_vm7 = vcmp.lt.s32.totalorder %v2620_v28, 8 }
 0x231   :  { %v1622_v32 = vsel %vm1576_vm8, %v1621_v24, %v1620_v61 }
 0x234   :  { %v1107_v48 = vpop.xlane.xlu1 %1106 }
 0x235   :  { %v1623_v31 = vperm.slane %v1107_v48, %v2917_v4  ;;  %v1296_v21 = vpop.xlane.xlu2 %1295 }
 0x236   :  { %v1203_v7 = vpop.xlane.xlu0 %1202  ;;  %v1745_v61 = vperm.slane %v1296_v21, %v2873_v56 }
 0x237   :  { %v1624_v63 = vsel %vm1580_vm9, %v1623_v31, %v1622_v32  ;;  %v1685_v39 = vperm.slane %v1203_v7, %v2917_v4  ;;  %v1759_v7 = vperm.slane %v2628_v43, %v3110_v25 }
 0x238   :  { %v1746_v40 = vsel %vm1576_vm8, %v1745_v61, %v1744_v41 }
 0x239   :  { %v1686_v20 = vsel %vm1580_vm9, %v1685_v39, %v1684_v13 }
 0x23c   :  { %v1206_v50 = vpop.xlane.xlu1 %1205 }
 0x23d   :  { %v1110_v42 = vpop.xlane.xlu2 %1109  ;;  %v1687_v22 = vperm.slane %v1206_v50, %v2924_v3 }
 0x23e   :  { %v3280_v38 = vpop.xlane.xlu0 %1391 }
 0x23f   :  { %v1688_v16 = vsel %vm1584_vm10, %v1687_v22, %v1686_v20 }
 0x244   :  { %v3282_v30 = vpop.xlane.xlu1 %1394 }
 0x245   :  { %v1209_v35 = vpop.xlane.xlu2 %1208 }
 0x246   :  { %v1299_v47 = vpop.xlane.xlu0 %1298  ;;  %v1689_v46 = vperm.slane %v1209_v35, %v2969_v12 }
 0x247   :  { %v1747_v44 = vperm.slane %v1299_v47, %v2917_v4 }
 0x248   :  { %v1690_v9 = vsel %vm1588_vm11, %v1689_v46, %v1688_v16  ;;  %v1807_v46 = vperm.slane %v3280_v38, %v2873_v56 }
 0x249   :  { %v1748_v26 = vsel %vm1580_vm9, %v1747_v44, %v1746_v40 }
 0x24c   :  { %v1302_v18 = vpop.xlane.xlu1 %1301 }
 0x24d   :  { %v3284_v34 = vpop.xlane.xlu2 %1397  ;;  %v1749_v49 = vperm.slane %v1302_v18, %v2924_v3 }
 0x24e   :  { %v1113_v51 = vpop.xlane.xlu0 %1112 }
 0x24f   :  { %v1750_v27 = vsel %vm1584_vm10, %v1749_v49, %v1748_v26 }
 0x254   :  { %v1116_v11 = vpop.xlane.xlu1 %1115 }
 0x255   :  { %v1305_v33 = vpop.xlane.xlu2 %1304 }
 0x256   :  { %v1212_v53 = vpop.xlane.xlu0 %1211  ;;  %v1751_v0 = vperm.slane %v1305_v33, %v2969_v12  ;;  %v1625_v33 = vperm.slane %v1110_v42, %v2924_v3  ;;  %v1811_v42 = vperm.slane %v3284_v34, %v2924_v3 }
 0x257   :  { %v1691_v10 = vperm.slane %v1212_v53, %v3011_v5  ;;  %v1627_v53 = vperm.slane %v1113_v51, %v2969_v12 }
 0x258   :  { %v1752_v15 = vsel %vm1588_vm11, %v1751_v0, %v1750_v27  ;;  %v1626_v22 = vsel %vm1584_vm10, %v1625_v33, %v1624_v63 }
 0x259   :  { %v1692_v62 = vsel %vm1592_vm12, %v1691_v10, %v1690_v9  ;;  %v1809_v10 = vperm.slane %v3282_v30, %v2917_v4  ;;  %v1628_v20 = vsel %vm1588_vm11, %v1627_v53, %v1626_v22  ;;  %v1808_v4 = vsel %vm1576_vm8, %v1807_v46, %v3274_v17 }
 0x25b   :  { %v1810_v30 = vsel %vm1580_vm9, %v1809_v10, %v1808_v4 }
 0x25c   :  { %v1215_v29 = vpop.xlane.xlu1 %1214 }
 0x25d   :  { %v1119_v2 = vpop.xlane.xlu2 %1118  ;;  %v1693_v59 = vperm.slane %v1215_v29, %v3018_v57  ;;  %v1629_v29 = vperm.slane %v1116_v11, %v3011_v5 }
 0x25e   :  { %v3286_v60 = vpop.xlane.xlu0 %1400  ;;  %v1631_v39 = vperm.slane %v1119_v2, %v3018_v57 }
 0x25f   :  { %v1694_v13 = vsel %vm1596_vm13, %v1693_v59, %v1692_v62  ;;  %v1630_v51 = vsel %vm1592_vm12, %v1629_v29, %v1628_v20  ;;  %v1813_v63 = vperm.slane %v3286_v60, %v2969_v12  ;;  %v1812_v60 = vsel %vm1584_vm10, %v1811_v42, %v1810_v30 }
 0x260   :  { %v1632_v2 = vsel %vm1596_vm13, %v1631_v39, %v1630_v51 }
 0x264   :  { %v3294_v55 = vpop.xlane.xlu1 %1403 }
 0x265   :  { %v1218_v36 = vpop.xlane.xlu2 %1217  ;;  %v1815_v38 = vperm.slane %v3294_v55, %v3011_v5 }
 0x266   :  { %v1695_v19 = vperm.slane %v1218_v36, %v3067_v14  ;;  %v1308_v8 = vpop.xlane.xlu0 %1307 }
 0x267   :  { %v1753_v52 = vperm.slane %v1308_v8, %v3011_v5  ;;  %v1814_v5 = vsel %vm1588_vm11, %v1813_v63, %v1812_v60 }
 0x268   :  { %v1696_v58 = vsel %vm1600_vm14, %v1695_v19, %v1694_v13  ;;  %v1816_v9 = vsel %vm1592_vm12, %v1815_v38, %v1814_v5 }
 0x269   :  { %v1698_v1 = vsel %vm1604_vm15, %v1697_v45, %v1696_v58  ;;  %v1754_v31 = vsel %vm1592_vm12, %v1753_v52, %v1752_v15 }
 0x26c   :  { %v1311_v24 = vpop.xlane.xlu1 %1310 }
 0x26d   :  { %v1755_v48 = vperm.slane %v1311_v24, %v3018_v57  ;;  %v1314_v32 = vpop.xlane.xlu2 %1313 }
 0x26e   :  { %v1757_v41 = vperm.slane %v1314_v32, %v3067_v14  ;;  %v1122_v18 = vpop.xlane.xlu0 %1121 }
 0x26f   :  { %v1756_v21 = vsel %vm1596_vm13, %v1755_v48, %v1754_v31  ;;  %v1633_v43 = vperm.slane %v1122_v18, %v3067_v14 }
 0x270   :  { %v1758_v50 = vsel %vm1600_vm14, %v1757_v41, %v1756_v21 }
 0x271   :  { %v1760_v35 = vsel %vm1604_vm15, %v1759_v7, %v1758_v50  ;;  %v1634_v3 = vsel %vm1600_vm14, %v1633_v43, %v1632_v2 }
 0x274   :  { %v1407_v47 = vpop.xlane.xlu1 %1406 }
 0x275   :  { %v1365_v59 = vpop.xlane.xlu2 %1364  ;;  %v1817_v34 = vperm.slane %v1407_v47, %v3018_v57 }
 0x276   :  { %v1410_v16 = vpop.xlane.xlu0 %1409  ;;  %v1790_v61 = vperm.slane %v1365_v59, %v3110_v25 }
 0x277   :  { %v1819_v57 = vperm.slane %v1410_v16, %v3067_v14  ;;  %v1818_v44 = vsel %vm1596_vm13, %v1817_v34, %v1816_v9 }
 0x278   :  { %v1791_v19 = vsel %vm1604_vm15, %v1790_v61, %v3106_v23 }
 0x27c   :  { %v1125_v11 = vpop.xlane.xlu1 %1124 }
 0x27d   :  { %v1635_v56 = vperm.slane %v1125_v11, %v3110_v25 }
 0x27f   :  { %v1636_v12 = vsel %vm1604_vm15, %v1635_v56, %v1634_v3 }
 0x280   :  { %v1824_v17 = vsel %vm1823_vm0, %v1636_v12, %v3126_v54 }
 0x281   :  { %v1826_v55 = vsel %vm1825_vm1, %v3170_v6, %v1824_v17  ;;  %v1820_v6 = vsel %vm1600_vm14, %v1819_v57, %v1818_v44 }
 0x282   :  { %v1828_v36 = vsel %vm1827_vm2, %v1698_v1, %v1826_v55 }
 0x283   :  { %v1830_v62 = vsel %vm1829_vm3, %v3154_v37, %v1828_v36 }
 0x284   :  { %v1413_v54 = vpop.xlane.xlu1 %1412  ;;  %v1832_v8 = vsel %vm1831_vm4, %v1760_v35, %v1830_v62 }
 0x285   :  { %v1821_v45 = vperm.slane %v1413_v54, %v3110_v25  ;;  %v1834_v49 = vsel %vm1833_vm5, %v1791_v19, %v1832_v8 }
 0x287   :  { %v1822_v14 = vsel %vm1604_vm15, %v1821_v45, %v1820_v6 }
 0x288   :  { %v1836_v13 = vsel %vm1835_vm6, %v1822_v14, %v1834_v49 }
 0x289   :  { %v1838_v0 = vsel %vm1416_vm7, %v1836_v13, -1e+30 }
 0x28a   :  { %1839 = vmax.xlane.f32.xlu2 %v1838_v0 }
 0x2fd   :  { %v1840_v58 = vpop.xlane.xlu2 %1839 }
 0x2fe   :  { %v1841_v37 = vsub.f32 %v1838_v0, %v1840_v58 }
 0x300   :  { %v1842_v40 = vmul.f32 1.442695, %v1841_v37 }
 0x302   :  { %2190 = vpow2.f32 %v1842_v40 }
 0x308   :  { %v2191_v23 = vpop.eup %2190 }
 0x309   :  { %1844 = vadd.xlane.f32.xlu0 %v2191_v23 }
 0x37c   :  { %v1845_v1 = vpop.xlane.xlu0 %1844 }
 0x37d   :  { %2192 = vrcp.f32 %v1845_v1  ;;  %v1857_v27 = vand.u32 2147483648, %v1845_v1  ;;  %v1855_v28 = vand.u32 2147483647, %v1845_v1  ;;  %vm1851_vm9 = vweird.f32 %v1845_v1 }
 0x37f   :  { %v1858_v48 = vor.u32 1.1754944e-38, %v1857_v27  ;;  %vm1856_vm11 = vcmp.eq.f32.partialorder %v1855_v28, 8.507059e+37 }
 0x383   :  { %v2193_v25 = vpop.eup %2192 }
 0x384   :  { %v1847_v52 = vmul.f32 %v2193_v25, %v1845_v1  ;;  %vm1852_vm8 = vweird.f32 %v2193_v25 }
 0x385   :  { %vm1853_vm10 = vmor %vm1851_vm9, %vm1852_vm8 }
 0x386   :  { %v1848_v26 = vsub.f32 1.0, %v1847_v52 }
 0x388   :  { %v1849_v24 = vmul.f32 %v2193_v25, %v1848_v26 }
 0x38a   :  { %v1850_v15 = vadd.f32 %v2193_v25, %v1849_v24 }
 0x38c   :  { %v1854_v31 = vsel %vm1853_vm10, %v2193_v25, %v1850_v15 }
 0x38d   :  { %v1859_v32 = vsel %vm1856_vm11, %v1858_v48, %v1854_v31 }
 0x38e   :  { %v1860_v21 = vmul.f32 %v2191_v23, %v1859_v32 }
 0x390   :  { %1861 = vst [vmem:[#allocation5] sm:$0xff] %v1860_v21 }
 0x391   :  { %1872 = dma.vmem_to_hbm [thread:$0]  %s1868_s23, 128, %s1870_s26, [#allocation4]  }
 0x392   :  { %2246 = dma.done.wait [#allocation4], 128  }
 0x393   :  { %2247 = vsyncadd [#allocation4], 4294967168 }
 0x394   :  { %1877 = vsyncpa [#allocation3], 1 }
 0x395   :  { %1878 = vsyncpa [#allocation4], 1 }

</bundles_post_ra>
